<compile_context>
chip_gen: v7x
topology: tpu7x:2x2x1
jax: 0.10.0
libtpu: 0.0.40
codegen_flags: <defaults>
</compile_context>

<pallas_src>
import functools

import jax
import jax.numpy as jnp
from jax import lax
from jax.experimental import pallas as pl
from jax.experimental.pallas import tpu as pltpu

INF = 1.0e8
FOCAL_ALPHA = 0.25
FOCAL_GAMMA = 2.0          # gamma fixed at 2.0 -> focal modulator is an exact square
NUM_CLASSES = 8

VMEM_LIMIT = 48 * 1024 * 1024   # scoped-VMEM override (v5e default is only 16 MiB)
PAD_LOC = -1.0e6                # padded locations fall outside every box -> background
PAD_LOGIT = -50.0               # padded logits -> focal contribution underflows to 0


def _round_up(x, m):
    return (x + m - 1) // m * m


# ---------------------------------------------------------------------------
# Fused kernel: GT assignment + sigmoid focal + GIoU + centerness BCE.
#   grid = (L/tile, B), both "arbitrary" (5 scalar partial sums carried in SMEM,
#   init at the first step, finalized into the 3 losses at the last step).
#   Per-location data is [R, 128] (R = tile/128 sublanes), logits are [C, R, 128].
# ---------------------------------------------------------------------------
def _fused_fcos_kernel(boxes_s, classes_s,               # scalar-prefetch SMEM refs
                       loc_ref, sr_ref, invs_ref,        # per-location constants
                       logits_ref, regp_ref, ctrp_ref,   # head predictions (per image)
                       out_ref, acc_ref,                 # SMEM output + scratch
                       *, num_gt, num_classes, alpha):
    li = pl.program_id(0)
    bi = pl.program_id(1)
    first = jnp.logical_and(li == 0, bi == 0)
    last = jnp.logical_and(li == pl.num_programs(0) - 1,
                           bi == pl.num_programs(1) - 1)

    @pl.when(first)
    def _init():
        acc_ref[0] = 0.0   # focal-loss sum
        acc_ref[1] = 0.0   # num positives
        acc_ref[2] = 0.0   # centerness-target sum (loss_denorm numerator)
        acc_ref[3] = 0.0   # sum((1 - giou) * ctr) over positives
        acc_ref[4] = 0.0   # centerness BCE sum over positives
        out_ref[0] = 0.0
        out_ref[1] = 0.0
        out_ref[2] = 0.0

    _, C, R, LN = logits_ref.shape
    xs = loc_ref[0]                      # [R,128]
    ys = loc_ref[1]
    lo = sr_ref[0]                       # size-of-interest low  [R,128]
    hi = sr_ref[1]                       # size-of-interest high [R,128]
    inv_s = invs_ref[...]                # 1/stride              [R,128]

    # ---- GT assignment: running first-argmin over the M GT boxes (pure VALU selects) ----
    best_area = jnp.full((R, LN), INF, jnp.float32)
    best_l = jnp.zeros((R, LN), jnp.float32)
    best_t = jnp.zeros((R, LN), jnp.float32)
    best_r = jnp.zeros((R, LN), jnp.float32)
    best_b = jnp.zeros((R, LN), jnp.float32)
    best_cls = jnp.full((R, LN), float(num_classes), jnp.float32)

    base = bi * (num_gt * 4)
    for m in range(num_gt):                              # static unroll; M is tiny
        x0 = boxes_s[base + 4 * m + 0]                   # SMEM scalar reads
        y0 = boxes_s[base + 4 * m + 1]
        x1 = boxes_s[base + 4 * m + 2]
        y1 = boxes_s[base + 4 * m + 3]
        cls_m = classes_s[bi * num_gt + m]

        l = xs - x0
        t = ys - y0
        r = x1 - xs
        b = y1 - ys
        min_ltrb = jnp.minimum(jnp.minimum(l, r), jnp.minimum(t, b))
        max_ltrb = jnp.maximum(jnp.maximum(l, r), jnp.maximum(t, b))
        in_box = min_ltrb > 0.0                          # CENTER_SAMPLE=False path
        cared = jnp.logical_and(max_ltrb >= lo, max_ltrb <= hi)
        area_m = (x1 - x0) * (y1 - y0)                   # scalar
        cand = jnp.where(jnp.logical_and(in_box, cared), area_m, INF)
        take = cand < best_area                          # strict '<' -> first-argmin on ties
        best_area = jnp.where(take, cand, best_area)
        best_l = jnp.where(take, l, best_l)
        best_t = jnp.where(take, t, best_t)
        best_r = jnp.where(take, r, best_r)
        best_b = jnp.where(take, b, best_b)
        best_cls = jnp.where(take, cls_m, best_cls)

    pos = best_area < INF                                # unassigned -> background
    acc_ref[1] = acc_ref[1] + jnp.sum(pos.astype(jnp.float32))

    # ---- sigmoid focal loss over all locations (gamma = 2 -> exact square) ----
    labels_i = jnp.where(pos, best_cls, float(num_classes)).astype(jnp.int32)   # [R,128]
    iota_c = lax.broadcasted_iota(jnp.int32, (C, R, LN), 0)
    tgt = (iota_c == labels_i[None, :, :]).astype(jnp.float32)                  # [C,R,128]
    x = logits_ref[0]                                                           # [C,R,128]
    e = jnp.exp(-jnp.abs(x))                             # single EUP exp per logit element
    inv_1pe = 1.0 / (1.0 + e)
    p = jnp.where(x >= 0.0, inv_1pe, e * inv_1pe)        # sigmoid(x), overflow-safe
    ce = jnp.maximum(x, 0.0) - x * tgt + jnp.log1p(e)    # BCE with logits
    p_t = p * tgt + (1.0 - p) * (1.0 - tgt)
    one_m = 1.0 - p_t
    alpha_t = alpha * tgt + (1.0 - alpha) * (1.0 - tgt)
    acc_ref[0] = acc_ref[0] + jnp.sum(ce * (one_m * one_m) * alpha_t)

    # ---- centerness targets (compute_ctrness_targets) on positives ----
    tl = best_l * inv_s                                  # stride-normalized reg targets
    tt = best_t * inv_s
    tr = best_r * inv_s
    tb = best_b * inv_s
    lr_min = jnp.minimum(tl, tr)
    lr_max = jnp.maximum(tl, tr)
    tb_min = jnp.minimum(tt, tb)
    tb_max = jnp.maximum(tt, tb)
    lr_max_s = jnp.where(pos, lr_max, 1.0)
    tb_max_s = jnp.where(pos, tb_max, 1.0)
    ratio = (lr_min / lr_max_s) * (tb_min / tb_max_s)
    ctr = jnp.where(pos, jnp.sqrt(jnp.maximum(ratio, 0.0)), 0.0)                # [R,128]
    acc_ref[2] = acc_ref[2] + jnp.sum(ctr)

    # ---- GIoU regression loss, weighted by centerness targets, positives only ----
    pl_ = regp_ref[0, 0]
    pt_ = regp_ref[0, 1]
    pr_ = regp_ref[0, 2]
    pb_ = regp_ref[0, 3]
    target_area = (tl + tr) * (tt + tb)
    pred_area = (pl_ + pr_) * (pt_ + pb_)
    w_int = jnp.minimum(pl_, tl) + jnp.minimum(pr_, tr)
    h_int = jnp.minimum(pb_, tb) + jnp.minimum(pt_, tt)
    g_w = jnp.maximum(pl_, tl) + jnp.maximum(pr_, tr)
    g_h = jnp.maximum(pb_, tb) + jnp.maximum(pt_, tt)
    ac_union = g_w * g_h + 1e-7                          # clamp (matches IOULoss, no inf)
    area_int = w_int * h_int
    area_union = target_area + pred_area - area_int
    ious = (area_int + 1.0) / (area_union + 1.0)
    gious = ious - (ac_union - area_union) / ac_union
    acc_ref[3] = acc_ref[3] + jnp.sum(jnp.where(pos, (1.0 - gious) * ctr, 0.0))

    # ---- centerness BCE with logits on positives ----
    xc = ctrp_ref[0, 0]                                  # [R,128]
    ec = jnp.exp(-jnp.abs(xc))
    bce = jnp.maximum(xc, 0.0) - xc * ctr + jnp.log1p(ec)
    acc_ref[4] = acc_ref[4] + jnp.sum(jnp.where(pos, bce, 0.0))

    @pl.when(last)
    def _finalize():
        num_pos = acc_ref[1]
        num_pos_avg = jnp.maximum(num_pos, 1.0)          # max(total_num_pos / num_gpus, 1.0)
        loss_denorm = jnp.maximum(acc_ref[2], 1e-6)
        has_pos = num_pos > 0.0
        out_ref[0] = acc_ref[0] / num_pos_avg
        out_ref[1] = jnp.where(has_pos, acc_ref[3] / loss_denorm, 0.0)
        out_ref[2] = jnp.where(has_pos, acc_ref[4] / num_pos_avg, 0.0)


def fcos_losses_fused(locations, size_ranges, inv_strides, boxes, classes,
                      logits, reg_pred, ctr_pred, *, tile_l=32768):
    """Fused FCOS loss.

    locations/size_ranges: [L,2] f32; inv_strides: [L] f32 (1/stride per location)
    boxes: [B,M,4] f32 (xyxy); classes: [B,M] int
    logits: [B,C,L]; reg_pred: [B,4,L]; ctr_pred: [B,1,L]
      (channel-major over the flattened (level, y, x) location order of `locations`)
    """
    L = locations.shape[0]
    B, M, _ = boxes.shape
    C = logits.shape[1]

    tile_l = max(1024, _round_up(tile_l, 1024))
    tile = min(tile_l, _round_up(L, 1024))               # multiple of 1024 -> R_tile % 8 == 0
    l_pad = _round_up(L, tile)
    pad = l_pad - L

    loc_T = locations.T                                  # [2,L]
    sr_T = size_ranges.T                                 # [2,L]
    invs = inv_strides                                   # [L]
    if pad:
        loc_T = jnp.pad(loc_T, ((0, 0), (0, pad)), constant_values=PAD_LOC)
        sr_T = jnp.pad(sr_T, ((0, 0), (0, pad)))
        invs = jnp.pad(invs, (0, pad), constant_values=1.0)
        logits = jnp.pad(logits, ((0, 0), (0, 0), (0, pad)), constant_values=PAD_LOGIT)
        reg_pred = jnp.pad(reg_pred, ((0, 0), (0, 0), (0, pad)))
        ctr_pred = jnp.pad(ctr_pred, ((0, 0), (0, 0), (0, pad)))

    r_all = l_pad // 128
    rt = tile // 128

    # free reshapes: split the minor location axis into (sublane, lane) for full vreg density
    loc3 = loc_T.reshape(2, r_all, 128)
    sr3 = sr_T.reshape(2, r_all, 128)
    invs3 = invs.reshape(r_all, 128)
    logits4 = logits.reshape(B, C, r_all, 128)
    regp4 = reg_pred.reshape(B, 4, r_all, 128)
    ctrp4 = ctr_pred.reshape(B, 1, r_all, 128)

    boxes_flat = boxes.reshape(-1).astype(jnp.float32)        # [B*M*4] -> SMEM
    classes_flat = classes.reshape(-1).astype(jnp.float32)    # [B*M]   -> SMEM

    kernel = functools.partial(_fused_fcos_kernel, num_gt=M,
                               num_classes=NUM_CLASSES, alpha=FOCAL_ALPHA)

    out = pl.pallas_call(
        kernel,
        out_shape=jax.ShapeDtypeStruct((3,), jnp.float32),
        grid_spec=pltpu.PrefetchScalarGridSpec(
            num_scalar_prefetch=2,                 # GT boxes + classes live in SMEM
            grid=(l_pad // tile, B),               # L-tile OUTER: per-location blocks DMA'd once
            in_specs=[
                pl.BlockSpec((2, rt, 128), lambda li, bi, *_: (0, li, 0)),   # locations
                pl.BlockSpec((2, rt, 128), lambda li, bi, *_: (0, li, 0)),   # size ranges
                pl.BlockSpec((rt, 128), lambda li, bi, *_: (li, 0)),         # 1/stride
                pl.BlockSpec((1, C, rt, 128), lambda li, bi, *_: (bi, 0, li, 0)),  # logits
                pl.BlockSpec((1, 4, rt, 128), lambda li, bi, *_: (bi, 0, li, 0)),  # reg pred
                pl.BlockSpec((1, 1, rt, 128), lambda li, bi, *_: (bi, 0, li, 0)),  # ctr pred
            ],
            out_specs=pl.BlockSpec(memory_space=pltpu.MemorySpace.SMEM),
            scratch_shapes=[pltpu.SMEM((8,), jnp.float32)],
        ),
        compiler_params=pltpu.CompilerParams(
            dimension_semantics=("arbitrary", "arbitrary"),   # scalar reduction over grid
            vmem_limit_bytes=VMEM_LIMIT),
    )(boxes_flat, classes_flat, loc3, sr3, invs3, logits4, regp4, ctrp4)

    return {"loss_fcos_cls": out[0], "loss_fcos_loc": out[1], "loss_fcos_ctr": out[2]}


# ---------------------------------------------------------------------------
# Glue (plain JAX): locations, size ranges, channel-major flattening + demo.
# ---------------------------------------------------------------------------
if __name__ == "__main__":
    key = jax.random.PRNGKey(0)
    B = 2
    C = NUM_CLASSES
    strides = [8, 16]
    spatial = [(16, 16), (8, 8)]
    soi = [(-1.0, 64.0), (64.0, INF)]
    M = 3  # gt boxes per image

    # locations per FPN level (FCOS compute_locations: row-major, x inner)
    locs_per_level = []
    for (H, W), s in zip(spatial, strides):
        sx = jnp.arange(0, W * s, s, dtype=jnp.float32) + s // 2
        sy = jnp.arange(0, H * s, s, dtype=jnp.float32) + s // 2
        yy, xx = jnp.meshgrid(sy, sx, indexing="ij")
        locs_per_level.append(jnp.stack([xx.reshape(-1), yy.reshape(-1)], axis=1))
    num_loc_list = [int(l.shape[0]) for l in locs_per_level]
    locations = jnp.concatenate(locs_per_level, axis=0)                      # [L,2]
    size_ranges = jnp.concatenate(
        [jnp.broadcast_to(jnp.array(r, jnp.float32)[None, :], (n, 2))
         for r, n in zip(soi, num_loc_list)], axis=0)                        # [L,2]
    inv_strides = jnp.concatenate(
        [jnp.full((n,), 1.0 / float(s), jnp.float32)
         for s, n in zip(strides, num_loc_list)], axis=0)                    # [L]

    # deterministic synthetic ground truth (xyxy boxes in a 128x128 image)
    boxes = jnp.array([[[10., 10., 60., 60.],
                        [40., 50., 120., 110.],
                        [5., 70., 30., 100.]],
                       [[0., 0., 30., 30.],
                        [60., 60., 127., 127.],
                        [20., 80., 90., 120.]]], jnp.float32)                # [B,M,4]
    classes = jnp.array([[1, 3, 5], [2, 0, 6]], jnp.int32)                   # [B,M]

    # deterministic synthetic head predictions, NCHW per level (like the PyTorch heads)
    logits_lvls, regp_lvls, ctrp_lvls = [], [], []
    for i, (H, W) in enumerate(spatial):
        k1, k2, k3 = jax.random.split(jax.random.fold_in(key, i), 3)
        logits_lvls.append(jax.random.normal(k1, (B, C, H, W), jnp.float32))
        regp_lvls.append(jax.random.uniform(k2, (B, 4, H, W), jnp.float32, 0.1, 8.0))
        ctrp_lvls.append(jax.random.normal(k3, (B, 1, H, W), jnp.float32))

    def flat_cmajor(xs, c):
        # NCHW per level -> channel-major [B, c, L], same (level, y, x) order as `locations`.
        return jnp.concatenate([x.reshape(B, c, -1) for x in xs], axis=2)

    logits = flat_cmajor(logits_lvls, C)                                     # [B,C,L]
    reg_pred = flat_cmajor(regp_lvls, 4)                                     # [B,4,L]
    ctr_pred = flat_cmajor(ctrp_lvls, 1)                                     # [B,1,L]

    losses = fcos_losses_fused(locations, size_ranges, inv_strides,
                               boxes, classes, logits, reg_pred, ctr_pred)
    losses = jax.block_until_ready(losses)
    assert all(bool(jnp.isfinite(v)) for v in losses.values())
    print("KERNEL_OK")
</pallas_src>

<mosaic_0001>
module attributes {stable_mosaic.version = 11 : i64} {
  func.func @_fused_fcos_kernel(%arg0: i32, %arg1: i32, %arg2: memref<24xf32, #tpu.memory_space<smem>>, %arg3: memref<6xf32, #tpu.memory_space<smem>>, %arg4: memref<2x8x128xf32, #tpu.memory_space<vmem>>, %arg5: memref<2x8x128xf32, #tpu.memory_space<vmem>>, %arg6: memref<8x128xf32, #tpu.memory_space<vmem>>, %arg7: memref<1x8x8x128xf32, #tpu.memory_space<vmem>>, %arg8: memref<1x4x8x128xf32, #tpu.memory_space<vmem>>, %arg9: memref<1x1x8x128xf32, #tpu.memory_space<vmem>>, %arg10: memref<3xf32, #tpu.memory_space<smem>>, %arg11: memref<8xf32, #tpu.memory_space<smem>>) attributes {dimension_semantics = [#tpu.dimension_semantics<arbitrary>, #tpu.dimension_semantics<arbitrary>], iteration_bounds = array<i64: 1, 2>, scalar_prefetch = 2 : i64, scratch_operands = 1 : i64, tpu.core_type = #tpu.core_type<tc>, window_params = [{transform_indices = @transform_0, window_bounds = array<i64: 2, 8, 128>}, {transform_indices = @transform_1, window_bounds = array<i64: 2, 8, 128>}, {transform_indices = @transform_2, window_bounds = array<i64: 8, 128>}, {transform_indices = @transform_3, window_bounds = array<i64: 1, 8, 8, 128>}, {transform_indices = @transform_4, window_bounds = array<i64: 1, 4, 8, 128>}, {transform_indices = @transform_5, window_bounds = array<i64: 1, 1, 8, 128>}, {transform_indices = @transform_6, window_bounds = array<i64: 3>}]} {
    %c0_i32 = arith.constant 0 : i32
    %0 = arith.cmpi eq, %arg0, %c0_i32 : i32
    %c0_i32_0 = arith.constant 0 : i32
    %1 = arith.cmpi eq, %arg1, %c0_i32_0 : i32
    %2 = arith.andi %0, %1 : i1
    %c0_i32_1 = arith.constant 0 : i32
    %3 = arith.cmpi eq, %arg0, %c0_i32_1 : i32
    %c1_i32 = arith.constant 1 : i32
    %4 = arith.cmpi eq, %arg1, %c1_i32 : i32
    %5 = arith.andi %3, %4 : i1
    %6 = arith.extui %2 : i1 to i32
    %c0_i32_2 = arith.constant 0 : i32
    %7 = arith.cmpi ne, %6, %c0_i32_2 : i32
    scf.if %7 {
      %cst_114 = arith.constant 0.000000e+00 : f32
      %c0_115 = arith.constant 0 : index
      %354 = memref.load %arg11[%c0_115] : memref<8xf32, #tpu.memory_space<smem>>
      memref.store %cst_114, %arg11[%c0_115] : memref<8xf32, #tpu.memory_space<smem>>
      %cst_116 = arith.constant 0.000000e+00 : f32
      %c1_117 = arith.constant 1 : index
      %355 = memref.load %arg11[%c1_117] : memref<8xf32, #tpu.memory_space<smem>>
      memref.store %cst_116, %arg11[%c1_117] : memref<8xf32, #tpu.memory_space<smem>>
      %cst_118 = arith.constant 0.000000e+00 : f32
      %c2_119 = arith.constant 2 : index
      %356 = memref.load %arg11[%c2_119] : memref<8xf32, #tpu.memory_space<smem>>
      memref.store %cst_118, %arg11[%c2_119] : memref<8xf32, #tpu.memory_space<smem>>
      %cst_120 = arith.constant 0.000000e+00 : f32
      %c3_121 = arith.constant 3 : index
      %357 = memref.load %arg11[%c3_121] : memref<8xf32, #tpu.memory_space<smem>>
      memref.store %cst_120, %arg11[%c3_121] : memref<8xf32, #tpu.memory_space<smem>>
      %cst_122 = arith.constant 0.000000e+00 : f32
      %c4_123 = arith.constant 4 : index
      %358 = memref.load %arg11[%c4_123] : memref<8xf32, #tpu.memory_space<smem>>
      memref.store %cst_122, %arg11[%c4_123] : memref<8xf32, #tpu.memory_space<smem>>
      %cst_124 = arith.constant 0.000000e+00 : f32
      %c0_125 = arith.constant 0 : index
      %359 = memref.load %arg10[%c0_125] : memref<3xf32, #tpu.memory_space<smem>>
      memref.store %cst_124, %arg10[%c0_125] : memref<3xf32, #tpu.memory_space<smem>>
      %cst_126 = arith.constant 0.000000e+00 : f32
      %c1_127 = arith.constant 1 : index
      %360 = memref.load %arg10[%c1_127] : memref<3xf32, #tpu.memory_space<smem>>
      memref.store %cst_126, %arg10[%c1_127] : memref<3xf32, #tpu.memory_space<smem>>
      %cst_128 = arith.constant 0.000000e+00 : f32
      %c2_129 = arith.constant 2 : index
      %361 = memref.load %arg10[%c2_129] : memref<3xf32, #tpu.memory_space<smem>>
      memref.store %cst_128, %arg10[%c2_129] : memref<3xf32, #tpu.memory_space<smem>>
    } else {
    }
    %c0 = arith.constant 0 : index
    %c0_3 = arith.constant 0 : index
    %c0_4 = arith.constant 0 : index
    %8 = vector.load %arg4[%c0, %c0_3, %c0_4] : memref<2x8x128xf32, #tpu.memory_space<vmem>>, vector<1x8x128xf32>
    %9 = vector.shape_cast %8 : vector<1x8x128xf32> to vector<8x128xf32>
    %c1 = arith.constant 1 : index
    %c0_5 = arith.constant 0 : index
    %c0_6 = arith.constant 0 : index
    %10 = vector.load %arg4[%c1, %c0_5, %c0_6] : memref<2x8x128xf32, #tpu.memory_space<vmem>>, vector<1x8x128xf32>
    %11 = vector.shape_cast %10 : vector<1x8x128xf32> to vector<8x128xf32>
    %c0_7 = arith.constant 0 : index
    %c0_8 = arith.constant 0 : index
    %c0_9 = arith.constant 0 : index
    %12 = vector.load %arg5[%c0_7, %c0_8, %c0_9] : memref<2x8x128xf32, #tpu.memory_space<vmem>>, vector<1x8x128xf32>
    %13 = vector.shape_cast %12 : vector<1x8x128xf32> to vector<8x128xf32>
    %c1_10 = arith.constant 1 : index
    %c0_11 = arith.constant 0 : index
    %c0_12 = arith.constant 0 : index
    %14 = vector.load %arg5[%c1_10, %c0_11, %c0_12] : memref<2x8x128xf32, #tpu.memory_space<vmem>>, vector<1x8x128xf32>
    %15 = vector.shape_cast %14 : vector<1x8x128xf32> to vector<8x128xf32>
    %c0_13 = arith.constant 0 : index
    %c0_14 = arith.constant 0 : index
    %16 = vector.load %arg6[%c0_13, %c0_14] : memref<8x128xf32, #tpu.memory_space<vmem>>, vector<8x128xf32>
    %cst = arith.constant 1.000000e+08 : f32
    %17 = vector.broadcast %cst : f32 to vector<8x128xf32>
    %cst_15 = arith.constant 0.000000e+00 : f32
    %18 = vector.broadcast %cst_15 : f32 to vector<8x128xf32>
    %cst_16 = arith.constant 0.000000e+00 : f32
    %19 = vector.broadcast %cst_16 : f32 to vector<8x128xf32>
    %cst_17 = arith.constant 0.000000e+00 : f32
    %20 = vector.broadcast %cst_17 : f32 to vector<8x128xf32>
    %cst_18 = arith.constant 0.000000e+00 : f32
    %21 = vector.broadcast %cst_18 : f32 to vector<8x128xf32>
    %cst_19 = arith.constant 8.000000e+00 : f32
    %22 = vector.broadcast %cst_19 : f32 to vector<8x128xf32>
    %c12_i32 = arith.constant 12 : i32
    %23 = arith.muli %arg1, %c12_i32 : i32
    %c0_i32_20 = arith.constant 0 : i32
    %24 = arith.addi %23, %c0_i32_20 : i32
    %c0_i32_21 = arith.constant 0 : i32
    %25 = arith.addi %24, %c0_i32_21 : i32
    %26 = arith.index_cast %25 : i32 to index
    %27 = memref.load %arg2[%26] : memref<24xf32, #tpu.memory_space<smem>>
    %c0_i32_22 = arith.constant 0 : i32
    %28 = arith.addi %23, %c0_i32_22 : i32
    %c1_i32_23 = arith.constant 1 : i32
    %29 = arith.addi %28, %c1_i32_23 : i32
    %30 = arith.index_cast %29 : i32 to index
    %31 = memref.load %arg2[%30] : memref<24xf32, #tpu.memory_space<smem>>
    %c0_i32_24 = arith.constant 0 : i32
    %32 = arith.addi %23, %c0_i32_24 : i32
    %c2_i32 = arith.constant 2 : i32
    %33 = arith.addi %32, %c2_i32 : i32
    %34 = arith.index_cast %33 : i32 to index
    %35 = memref.load %arg2[%34] : memref<24xf32, #tpu.memory_space<smem>>
    %c0_i32_25 = arith.constant 0 : i32
    %36 = arith.addi %23, %c0_i32_25 : i32
    %c3_i32 = arith.constant 3 : i32
    %37 = arith.addi %36, %c3_i32 : i32
    %38 = arith.index_cast %37 : i32 to index
    %39 = memref.load %arg2[%38] : memref<24xf32, #tpu.memory_space<smem>>
    %c3_i32_26 = arith.constant 3 : i32
    %40 = arith.muli %arg1, %c3_i32_26 : i32
    %c0_i32_27 = arith.constant 0 : i32
    %41 = arith.addi %40, %c0_i32_27 : i32
    %42 = arith.index_cast %41 : i32 to index
    %43 = memref.load %arg3[%42] : memref<6xf32, #tpu.memory_space<smem>>
    %44 = vector.broadcast %27 : f32 to vector<8x128xf32>
    %45 = arith.subf %9, %44 : vector<8x128xf32>
    %46 = vector.broadcast %31 : f32 to vector<8x128xf32>
    %47 = arith.subf %11, %46 : vector<8x128xf32>
    %48 = vector.broadcast %35 : f32 to vector<8x128xf32>
    %49 = arith.subf %48, %9 : vector<8x128xf32>
    %50 = vector.broadcast %39 : f32 to vector<8x128xf32>
    %51 = arith.subf %50, %11 : vector<8x128xf32>
    %52 = arith.minimumf %45, %49 : vector<8x128xf32>
    %53 = arith.minimumf %47, %51 : vector<8x128xf32>
    %54 = arith.minimumf %52, %53 : vector<8x128xf32>
    %55 = arith.maximumf %45, %49 : vector<8x128xf32>
    %56 = arith.maximumf %47, %51 : vector<8x128xf32>
    %57 = arith.maximumf %55, %56 : vector<8x128xf32>
    %cst_28 = arith.constant 0.000000e+00 : f32
    %58 = vector.broadcast %cst_28 : f32 to vector<8x128xf32>
    %59 = arith.cmpf ogt, %54, %58 : vector<8x128xf32>
    %60 = arith.cmpf oge, %57, %13 : vector<8x128xf32>
    %61 = arith.cmpf ole, %57, %15 : vector<8x128xf32>
    %62 = arith.andi %60, %61 : vector<8x128xi1>
    %63 = arith.subf %35, %27 : f32
    %64 = arith.subf %39, %31 : f32
    %65 = arith.mulf %63, %64 : f32
    %66 = arith.andi %59, %62 : vector<8x128xi1>
    %cst_29 = arith.constant 1.000000e+08 : f32
    %67 = vector.broadcast %65 : f32 to vector<8x128xf32>
    %68 = vector.broadcast %cst_29 : f32 to vector<8x128xf32>
    %69 = arith.select %66, %67, %68 : vector<8x128xi1>, vector<8x128xf32>
    %70 = arith.cmpf olt, %69, %17 : vector<8x128xf32>
    %71 = arith.select %70, %69, %17 : vector<8x128xi1>, vector<8x128xf32>
    %72 = arith.select %70, %45, %18 : vector<8x128xi1>, vector<8x128xf32>
    %73 = arith.select %70, %47, %19 : vector<8x128xi1>, vector<8x128xf32>
    %74 = arith.select %70, %49, %20 : vector<8x128xi1>, vector<8x128xf32>
    %75 = arith.select %70, %51, %21 : vector<8x128xi1>, vector<8x128xf32>
    %76 = vector.broadcast %43 : f32 to vector<8x128xf32>
    %77 = arith.select %70, %76, %22 : vector<8x128xi1>, vector<8x128xf32>
    %c4_i32 = arith.constant 4 : i32
    %78 = arith.addi %23, %c4_i32 : i32
    %c0_i32_30 = arith.constant 0 : i32
    %79 = arith.addi %78, %c0_i32_30 : i32
    %80 = arith.index_cast %79 : i32 to index
    %81 = memref.load %arg2[%80] : memref<24xf32, #tpu.memory_space<smem>>
    %c4_i32_31 = arith.constant 4 : i32
    %82 = arith.addi %23, %c4_i32_31 : i32
    %c1_i32_32 = arith.constant 1 : i32
    %83 = arith.addi %82, %c1_i32_32 : i32
    %84 = arith.index_cast %83 : i32 to index
    %85 = memref.load %arg2[%84] : memref<24xf32, #tpu.memory_space<smem>>
    %c4_i32_33 = arith.constant 4 : i32
    %86 = arith.addi %23, %c4_i32_33 : i32
    %c2_i32_34 = arith.constant 2 : i32
    %87 = arith.addi %86, %c2_i32_34 : i32
    %88 = arith.index_cast %87 : i32 to index
    %89 = memref.load %arg2[%88] : memref<24xf32, #tpu.memory_space<smem>>
    %c4_i32_35 = arith.constant 4 : i32
    %90 = arith.addi %23, %c4_i32_35 : i32
    %c3_i32_36 = arith.constant 3 : i32
    %91 = arith.addi %90, %c3_i32_36 : i32
    %92 = arith.index_cast %91 : i32 to index
    %93 = memref.load %arg2[%92] : memref<24xf32, #tpu.memory_space<smem>>
    %c3_i32_37 = arith.constant 3 : i32
    %94 = arith.muli %arg1, %c3_i32_37 : i32
    %c1_i32_38 = arith.constant 1 : i32
    %95 = arith.addi %94, %c1_i32_38 : i32
    %96 = arith.index_cast %95 : i32 to index
    %97 = memref.load %arg3[%96] : memref<6xf32, #tpu.memory_space<smem>>
    %98 = vector.broadcast %81 : f32 to vector<8x128xf32>
    %99 = arith.subf %9, %98 : vector<8x128xf32>
    %100 = vector.broadcast %85 : f32 to vector<8x128xf32>
    %101 = arith.subf %11, %100 : vector<8x128xf32>
    %102 = vector.broadcast %89 : f32 to vector<8x128xf32>
    %103 = arith.subf %102, %9 : vector<8x128xf32>
    %104 = vector.broadcast %93 : f32 to vector<8x128xf32>
    %105 = arith.subf %104, %11 : vector<8x128xf32>
    %106 = arith.minimumf %99, %103 : vector<8x128xf32>
    %107 = arith.minimumf %101, %105 : vector<8x128xf32>
    %108 = arith.minimumf %106, %107 : vector<8x128xf32>
    %109 = arith.maximumf %99, %103 : vector<8x128xf32>
    %110 = arith.maximumf %101, %105 : vector<8x128xf32>
    %111 = arith.maximumf %109, %110 : vector<8x128xf32>
    %cst_39 = arith.constant 0.000000e+00 : f32
    %112 = vector.broadcast %cst_39 : f32 to vector<8x128xf32>
    %113 = arith.cmpf ogt, %108, %112 : vector<8x128xf32>
    %114 = arith.cmpf oge, %111, %13 : vector<8x128xf32>
    %115 = arith.cmpf ole, %111, %15 : vector<8x128xf32>
    %116 = arith.andi %114, %115 : vector<8x128xi1>
    %117 = arith.subf %89, %81 : f32
    %118 = arith.subf %93, %85 : f32
    %119 = arith.mulf %117, %118 : f32
    %120 = arith.andi %113, %116 : vector<8x128xi1>
    %cst_40 = arith.constant 1.000000e+08 : f32
    %121 = vector.broadcast %119 : f32 to vector<8x128xf32>
    %122 = vector.broadcast %cst_40 : f32 to vector<8x128xf32>
    %123 = arith.select %120, %121, %122 : vector<8x128xi1>, vector<8x128xf32>
    %124 = arith.cmpf olt, %123, %71 : vector<8x128xf32>
    %125 = arith.select %124, %123, %71 : vector<8x128xi1>, vector<8x128xf32>
    %126 = arith.select %124, %99, %72 : vector<8x128xi1>, vector<8x128xf32>
    %127 = arith.select %124, %101, %73 : vector<8x128xi1>, vector<8x128xf32>
    %128 = arith.select %124, %103, %74 : vector<8x128xi1>, vector<8x128xf32>
    %129 = arith.select %124, %105, %75 : vector<8x128xi1>, vector<8x128xf32>
    %130 = vector.broadcast %97 : f32 to vector<8x128xf32>
    %131 = arith.select %124, %130, %77 : vector<8x128xi1>, vector<8x128xf32>
    %c8_i32 = arith.constant 8 : i32
    %132 = arith.addi %23, %c8_i32 : i32
    %c0_i32_41 = arith.constant 0 : i32
    %133 = arith.addi %132, %c0_i32_41 : i32
    %134 = arith.index_cast %133 : i32 to index
    %135 = memref.load %arg2[%134] : memref<24xf32, #tpu.memory_space<smem>>
    %c8_i32_42 = arith.constant 8 : i32
    %136 = arith.addi %23, %c8_i32_42 : i32
    %c1_i32_43 = arith.constant 1 : i32
    %137 = arith.addi %136, %c1_i32_43 : i32
    %138 = arith.index_cast %137 : i32 to index
    %139 = memref.load %arg2[%138] : memref<24xf32, #tpu.memory_space<smem>>
    %c8_i32_44 = arith.constant 8 : i32
    %140 = arith.addi %23, %c8_i32_44 : i32
    %c2_i32_45 = arith.constant 2 : i32
    %141 = arith.addi %140, %c2_i32_45 : i32
    %142 = arith.index_cast %141 : i32 to index
    %143 = memref.load %arg2[%142] : memref<24xf32, #tpu.memory_space<smem>>
    %c8_i32_46 = arith.constant 8 : i32
    %144 = arith.addi %23, %c8_i32_46 : i32
    %c3_i32_47 = arith.constant 3 : i32
    %145 = arith.addi %144, %c3_i32_47 : i32
    %146 = arith.index_cast %145 : i32 to index
    %147 = memref.load %arg2[%146] : memref<24xf32, #tpu.memory_space<smem>>
    %c3_i32_48 = arith.constant 3 : i32
    %148 = arith.muli %arg1, %c3_i32_48 : i32
    %c2_i32_49 = arith.constant 2 : i32
    %149 = arith.addi %148, %c2_i32_49 : i32
    %150 = arith.index_cast %149 : i32 to index
    %151 = memref.load %arg3[%150] : memref<6xf32, #tpu.memory_space<smem>>
    %152 = vector.broadcast %135 : f32 to vector<8x128xf32>
    %153 = arith.subf %9, %152 : vector<8x128xf32>
    %154 = vector.broadcast %139 : f32 to vector<8x128xf32>
    %155 = arith.subf %11, %154 : vector<8x128xf32>
    %156 = vector.broadcast %143 : f32 to vector<8x128xf32>
    %157 = arith.subf %156, %9 : vector<8x128xf32>
    %158 = vector.broadcast %147 : f32 to vector<8x128xf32>
    %159 = arith.subf %158, %11 : vector<8x128xf32>
    %160 = arith.minimumf %153, %157 : vector<8x128xf32>
    %161 = arith.minimumf %155, %159 : vector<8x128xf32>
    %162 = arith.minimumf %160, %161 : vector<8x128xf32>
    %163 = arith.maximumf %153, %157 : vector<8x128xf32>
    %164 = arith.maximumf %155, %159 : vector<8x128xf32>
    %165 = arith.maximumf %163, %164 : vector<8x128xf32>
    %cst_50 = arith.constant 0.000000e+00 : f32
    %166 = vector.broadcast %cst_50 : f32 to vector<8x128xf32>
    %167 = arith.cmpf ogt, %162, %166 : vector<8x128xf32>
    %168 = arith.cmpf oge, %165, %13 : vector<8x128xf32>
    %169 = arith.cmpf ole, %165, %15 : vector<8x128xf32>
    %170 = arith.andi %168, %169 : vector<8x128xi1>
    %171 = arith.subf %143, %135 : f32
    %172 = arith.subf %147, %139 : f32
    %173 = arith.mulf %171, %172 : f32
    %174 = arith.andi %167, %170 : vector<8x128xi1>
    %cst_51 = arith.constant 1.000000e+08 : f32
    %175 = vector.broadcast %173 : f32 to vector<8x128xf32>
    %176 = vector.broadcast %cst_51 : f32 to vector<8x128xf32>
    %177 = arith.select %174, %175, %176 : vector<8x128xi1>, vector<8x128xf32>
    %178 = arith.cmpf olt, %177, %125 : vector<8x128xf32>
    %179 = arith.select %178, %177, %125 : vector<8x128xi1>, vector<8x128xf32>
    %180 = arith.select %178, %153, %126 : vector<8x128xi1>, vector<8x128xf32>
    %181 = arith.select %178, %155, %127 : vector<8x128xi1>, vector<8x128xf32>
    %182 = arith.select %178, %157, %128 : vector<8x128xi1>, vector<8x128xf32>
    %183 = arith.select %178, %159, %129 : vector<8x128xi1>, vector<8x128xf32>
    %184 = vector.broadcast %151 : f32 to vector<8x128xf32>
    %185 = arith.select %178, %184, %131 : vector<8x128xi1>, vector<8x128xf32>
    %cst_52 = arith.constant 1.000000e+08 : f32
    %186 = vector.broadcast %cst_52 : f32 to vector<8x128xf32>
    %187 = arith.cmpf olt, %179, %186 : vector<8x128xf32>
    %c1_53 = arith.constant 1 : index
    %188 = memref.load %arg11[%c1_53] : memref<8xf32, #tpu.memory_space<smem>>
    %189 = arith.extui %187 : vector<8x128xi1> to vector<8x128xi32>
    %190 = arith.sitofp %189 : vector<8x128xi32> to vector<8x128xf32>
    %191 = vector.shape_cast %190 : vector<8x128xf32> to vector<1x8x128xf32>
    %cst_54 = arith.constant dense<0.000000e+00> : vector<1xf32>
    %192 = vector.multi_reduction <add>, %191, %cst_54 [1, 2] : vector<1x8x128xf32> to vector<1xf32>
    %193 = vector.shape_cast %192 : vector<1xf32> to vector<1x1x1xf32>
    %194 = vector.extract %193[0, 0, 0] : f32 from vector<1x1x1xf32>
    %195 = arith.addf %188, %194 : f32
    %c1_55 = arith.constant 1 : index
    %196 = memref.load %arg11[%c1_55] : memref<8xf32, #tpu.memory_space<smem>>
    memref.store %195, %arg11[%c1_55] : memref<8xf32, #tpu.memory_space<smem>>
    %cst_56 = arith.constant 8.000000e+00 : f32
    %197 = vector.broadcast %cst_56 : f32 to vector<8x128xf32>
    %198 = arith.select %187, %185, %197 : vector<8x128xi1>, vector<8x128xf32>
    %199 = arith.fptosi %198 : vector<8x128xf32> to vector<8x128xi32>
    %200 = tpu.iota {dimensions = array<i32: 0>} : vector<8x8x128xi32>
    %201 = vector.shape_cast %199 : vector<8x128xi32> to vector<1x8x128xi32>
    %202 = vector.broadcast %201 : vector<1x8x128xi32> to vector<8x8x128xi32>
    %203 = arith.cmpi eq, %200, %202 : vector<8x8x128xi32>
    %204 = arith.extui %203 : vector<8x8x128xi1> to vector<8x8x128xi32>
    %205 = arith.sitofp %204 : vector<8x8x128xi32> to vector<8x8x128xf32>
    %c0_57 = arith.constant 0 : index
    %c0_58 = arith.constant 0 : index
    %c0_59 = arith.constant 0 : index
    %c0_60 = arith.constant 0 : index
    %206 = vector.load %arg7[%c0_57, %c0_58, %c0_59, %c0_60] : memref<1x8x8x128xf32, #tpu.memory_space<vmem>>, vector<1x8x8x128xf32>
    %207 = vector.shape_cast %206 : vector<1x8x8x128xf32> to vector<8x8x128xf32>
    %208 = math.absf %207 : vector<8x8x128xf32>
    %cst_61 = arith.constant 0.000000e+00 : f32
    %209 = vector.broadcast %cst_61 : f32 to vector<8x8x128xf32>
    %210 = arith.subf %209, %208 : vector<8x8x128xf32>
    %211 = math.exp %210 : vector<8x8x128xf32>
    %cst_62 = arith.constant 1.000000e+00 : f32
    %212 = vector.broadcast %cst_62 : f32 to vector<8x8x128xf32>
    %213 = arith.addf %212, %211 : vector<8x8x128xf32>
    %cst_63 = arith.constant 1.000000e+00 : f32
    %214 = vector.broadcast %cst_63 : f32 to vector<8x8x128xf32>
    %215 = arith.divf %214, %213 : vector<8x8x128xf32>
    %cst_64 = arith.constant 0.000000e+00 : f32
    %216 = vector.broadcast %cst_64 : f32 to vector<8x8x128xf32>
    %217 = arith.cmpf oge, %207, %216 : vector<8x8x128xf32>
    %218 = arith.mulf %211, %215 : vector<8x8x128xf32>
    %219 = arith.select %217, %215, %218 : vector<8x8x128xi1>, vector<8x8x128xf32>
    %cst_65 = arith.constant 0.000000e+00 : f32
    %220 = vector.broadcast %cst_65 : f32 to vector<8x8x128xf32>
    %221 = arith.maximumf %207, %220 : vector<8x8x128xf32>
    %222 = arith.mulf %207, %205 : vector<8x8x128xf32>
    %223 = arith.subf %221, %222 : vector<8x8x128xf32>
    %224 = math.log1p %211 : vector<8x8x128xf32>
    %225 = arith.addf %223, %224 : vector<8x8x128xf32>
    %226 = arith.mulf %219, %205 : vector<8x8x128xf32>
    %cst_66 = arith.constant 1.000000e+00 : f32
    %227 = vector.broadcast %cst_66 : f32 to vector<8x8x128xf32>
    %228 = arith.subf %227, %219 : vector<8x8x128xf32>
    %cst_67 = arith.constant 1.000000e+00 : f32
    %229 = vector.broadcast %cst_67 : f32 to vector<8x8x128xf32>
    %230 = arith.subf %229, %205 : vector<8x8x128xf32>
    %231 = arith.mulf %228, %230 : vector<8x8x128xf32>
    %232 = arith.addf %226, %231 : vector<8x8x128xf32>
    %cst_68 = arith.constant 1.000000e+00 : f32
    %233 = vector.broadcast %cst_68 : f32 to vector<8x8x128xf32>
    %234 = arith.subf %233, %232 : vector<8x8x128xf32>
    %cst_69 = arith.constant 2.500000e-01 : f32
    %235 = vector.broadcast %cst_69 : f32 to vector<8x8x128xf32>
    %236 = arith.mulf %235, %205 : vector<8x8x128xf32>
    %cst_70 = arith.constant 1.000000e+00 : f32
    %237 = vector.broadcast %cst_70 : f32 to vector<8x8x128xf32>
    %238 = arith.subf %237, %205 : vector<8x8x128xf32>
    %cst_71 = arith.constant 7.500000e-01 : f32
    %239 = vector.broadcast %cst_71 : f32 to vector<8x8x128xf32>
    %240 = arith.mulf %239, %238 : vector<8x8x128xf32>
    %241 = arith.addf %236, %240 : vector<8x8x128xf32>
    %c0_72 = arith.constant 0 : index
    %242 = memref.load %arg11[%c0_72] : memref<8xf32, #tpu.memory_space<smem>>
    %243 = arith.mulf %234, %234 : vector<8x8x128xf32>
    %244 = arith.mulf %225, %243 : vector<8x8x128xf32>
    %245 = arith.mulf %244, %241 : vector<8x8x128xf32>
    %246 = vector.shape_cast %245 : vector<8x8x128xf32> to vector<1x8x8x128xf32>
    %cst_73 = arith.constant dense<0.000000e+00> : vector<1xf32>
    %247 = vector.multi_reduction <add>, %246, %cst_73 [1, 2, 3] : vector<1x8x8x128xf32> to vector<1xf32>
    %248 = vector.shape_cast %247 : vector<1xf32> to vector<1x1x1x1xf32>
    %249 = vector.extract %248[0, 0, 0, 0] : f32 from vector<1x1x1x1xf32>
    %250 = arith.addf %242, %249 : f32
    %c0_74 = arith.constant 0 : index
    %251 = memref.load %arg11[%c0_74] : memref<8xf32, #tpu.memory_space<smem>>
    memref.store %250, %arg11[%c0_74] : memref<8xf32, #tpu.memory_space<smem>>
    %252 = arith.mulf %180, %16 : vector<8x128xf32>
    %253 = arith.mulf %181, %16 : vector<8x128xf32>
    %254 = arith.mulf %182, %16 : vector<8x128xf32>
    %255 = arith.mulf %183, %16 : vector<8x128xf32>
    %256 = arith.minimumf %252, %254 : vector<8x128xf32>
    %257 = arith.maximumf %252, %254 : vector<8x128xf32>
    %258 = arith.minimumf %253, %255 : vector<8x128xf32>
    %259 = arith.maximumf %253, %255 : vector<8x128xf32>
    %cst_75 = arith.constant 1.000000e+00 : f32
    %260 = vector.broadcast %cst_75 : f32 to vector<8x128xf32>
    %261 = arith.select %187, %257, %260 : vector<8x128xi1>, vector<8x128xf32>
    %cst_76 = arith.constant 1.000000e+00 : f32
    %262 = vector.broadcast %cst_76 : f32 to vector<8x128xf32>
    %263 = arith.select %187, %259, %262 : vector<8x128xi1>, vector<8x128xf32>
    %264 = arith.divf %256, %261 : vector<8x128xf32>
    %265 = arith.divf %258, %263 : vector<8x128xf32>
    %266 = arith.mulf %264, %265 : vector<8x128xf32>
    %cst_77 = arith.constant 0.000000e+00 : f32
    %267 = vector.broadcast %cst_77 : f32 to vector<8x128xf32>
    %268 = arith.maximumf %266, %267 : vector<8x128xf32>
    %269 = math.sqrt %268 : vector<8x128xf32>
    %cst_78 = arith.constant 0.000000e+00 : f32
    %270 = vector.broadcast %cst_78 : f32 to vector<8x128xf32>
    %271 = arith.select %187, %269, %270 : vector<8x128xi1>, vector<8x128xf32>
    %c2 = arith.constant 2 : index
    %272 = memref.load %arg11[%c2] : memref<8xf32, #tpu.memory_space<smem>>
    %273 = vector.shape_cast %271 : vector<8x128xf32> to vector<1x8x128xf32>
    %cst_79 = arith.constant dense<0.000000e+00> : vector<1xf32>
    %274 = vector.multi_reduction <add>, %273, %cst_79 [1, 2] : vector<1x8x128xf32> to vector<1xf32>
    %275 = vector.shape_cast %274 : vector<1xf32> to vector<1x1x1xf32>
    %276 = vector.extract %275[0, 0, 0] : f32 from vector<1x1x1xf32>
    %277 = arith.addf %272, %276 : f32
    %c2_80 = arith.constant 2 : index
    %278 = memref.load %arg11[%c2_80] : memref<8xf32, #tpu.memory_space<smem>>
    memref.store %277, %arg11[%c2_80] : memref<8xf32, #tpu.memory_space<smem>>
    %c0_81 = arith.constant 0 : index
    %c0_82 = arith.constant 0 : index
    %c0_83 = arith.constant 0 : index
    %c0_84 = arith.constant 0 : index
    %279 = vector.load %arg8[%c0_81, %c0_82, %c0_83, %c0_84] : memref<1x4x8x128xf32, #tpu.memory_space<vmem>>, vector<1x1x8x128xf32>
    %280 = vector.shape_cast %279 : vector<1x1x8x128xf32> to vector<8x128xf32>
    %c0_85 = arith.constant 0 : index
    %c1_86 = arith.constant 1 : index
    %c0_87 = arith.constant 0 : index
    %c0_88 = arith.constant 0 : index
    %281 = vector.load %arg8[%c0_85, %c1_86, %c0_87, %c0_88] : memref<1x4x8x128xf32, #tpu.memory_space<vmem>>, vector<1x1x8x128xf32>
    %282 = vector.shape_cast %281 : vector<1x1x8x128xf32> to vector<8x128xf32>
    %c0_89 = arith.constant 0 : index
    %c2_90 = arith.constant 2 : index
    %c0_91 = arith.constant 0 : index
    %c0_92 = arith.constant 0 : index
    %283 = vector.load %arg8[%c0_89, %c2_90, %c0_91, %c0_92] : memref<1x4x8x128xf32, #tpu.memory_space<vmem>>, vector<1x1x8x128xf32>
    %284 = vector.shape_cast %283 : vector<1x1x8x128xf32> to vector<8x128xf32>
    %c0_93 = arith.constant 0 : index
    %c3 = arith.constant 3 : index
    %c0_94 = arith.constant 0 : index
    %c0_95 = arith.constant 0 : index
    %285 = vector.load %arg8[%c0_93, %c3, %c0_94, %c0_95] : memref<1x4x8x128xf32, #tpu.memory_space<vmem>>, vector<1x1x8x128xf32>
    %286 = vector.shape_cast %285 : vector<1x1x8x128xf32> to vector<8x128xf32>
    %287 = arith.addf %252, %254 : vector<8x128xf32>
    %288 = arith.addf %253, %255 : vector<8x128xf32>
    %289 = arith.mulf %287, %288 : vector<8x128xf32>
    %290 = arith.addf %280, %284 : vector<8x128xf32>
    %291 = arith.addf %282, %286 : vector<8x128xf32>
    %292 = arith.mulf %290, %291 : vector<8x128xf32>
    %293 = arith.minimumf %280, %252 : vector<8x128xf32>
    %294 = arith.minimumf %284, %254 : vector<8x128xf32>
    %295 = arith.addf %293, %294 : vector<8x128xf32>
    %296 = arith.minimumf %286, %255 : vector<8x128xf32>
    %297 = arith.minimumf %282, %253 : vector<8x128xf32>
    %298 = arith.addf %296, %297 : vector<8x128xf32>
    %299 = arith.maximumf %280, %252 : vector<8x128xf32>
    %300 = arith.maximumf %284, %254 : vector<8x128xf32>
    %301 = arith.addf %299, %300 : vector<8x128xf32>
    %302 = arith.maximumf %286, %255 : vector<8x128xf32>
    %303 = arith.maximumf %282, %253 : vector<8x128xf32>
    %304 = arith.addf %302, %303 : vector<8x128xf32>
    %305 = arith.mulf %301, %304 : vector<8x128xf32>
    %cst_96 = arith.constant 1.000000e-07 : f32
    %306 = vector.broadcast %cst_96 : f32 to vector<8x128xf32>
    %307 = arith.addf %305, %306 : vector<8x128xf32>
    %308 = arith.mulf %295, %298 : vector<8x128xf32>
    %309 = arith.addf %289, %292 : vector<8x128xf32>
    %310 = arith.subf %309, %308 : vector<8x128xf32>
    %cst_97 = arith.constant 1.000000e+00 : f32
    %311 = vector.broadcast %cst_97 : f32 to vector<8x128xf32>
    %312 = arith.addf %308, %311 : vector<8x128xf32>
    %cst_98 = arith.constant 1.000000e+00 : f32
    %313 = vector.broadcast %cst_98 : f32 to vector<8x128xf32>
    %314 = arith.addf %310, %313 : vector<8x128xf32>
    %315 = arith.divf %312, %314 : vector<8x128xf32>
    %316 = arith.subf %307, %310 : vector<8x128xf32>
    %317 = arith.divf %316, %307 : vector<8x128xf32>
    %318 = arith.subf %315, %317 : vector<8x128xf32>
    %c3_99 = arith.constant 3 : index
    %319 = memref.load %arg11[%c3_99] : memref<8xf32, #tpu.memory_space<smem>>
    %cst_100 = arith.constant 1.000000e+00 : f32
    %320 = vector.broadcast %cst_100 : f32 to vector<8x128xf32>
    %321 = arith.subf %320, %318 : vector<8x128xf32>
    %322 = arith.mulf %321, %271 : vector<8x128xf32>
    %cst_101 = arith.constant 0.000000e+00 : f32
    %323 = vector.broadcast %cst_101 : f32 to vector<8x128xf32>
    %324 = arith.select %187, %322, %323 : vector<8x128xi1>, vector<8x128xf32>
    %325 = vector.shape_cast %324 : vector<8x128xf32> to vector<1x8x128xf32>
    %cst_102 = arith.constant dense<0.000000e+00> : vector<1xf32>
    %326 = vector.multi_reduction <add>, %325, %cst_102 [1, 2] : vector<1x8x128xf32> to vector<1xf32>
    %327 = vector.shape_cast %326 : vector<1xf32> to vector<1x1x1xf32>
    %328 = vector.extract %327[0, 0, 0] : f32 from vector<1x1x1xf32>
    %329 = arith.addf %319, %328 : f32
    %c3_103 = arith.constant 3 : index
    %330 = memref.load %arg11[%c3_103] : memref<8xf32, #tpu.memory_space<smem>>
    memref.store %329, %arg11[%c3_103] : memref<8xf32, #tpu.memory_space<smem>>
    %c0_104 = arith.constant 0 : index
    %c0_105 = arith.constant 0 : index
    %c0_106 = arith.constant 0 : index
    %c0_107 = arith.constant 0 : index
    %331 = vector.load %arg9[%c0_104, %c0_105, %c0_106, %c0_107] : memref<1x1x8x128xf32, #tpu.memory_space<vmem>>, vector<1x1x8x128xf32>
    %332 = vector.shape_cast %331 : vector<1x1x8x128xf32> to vector<8x128xf32>
    %333 = math.absf %332 : vector<8x128xf32>
    %cst_108 = arith.constant 0.000000e+00 : f32
    %334 = vector.broadcast %cst_108 : f32 to vector<8x128xf32>
    %335 = arith.subf %334, %333 : vector<8x128xf32>
    %336 = math.exp %335 : vector<8x128xf32>
    %cst_109 = arith.constant 0.000000e+00 : f32
    %337 = vector.broadcast %cst_109 : f32 to vector<8x128xf32>
    %338 = arith.maximumf %332, %337 : vector<8x128xf32>
    %339 = arith.mulf %332, %271 : vector<8x128xf32>
    %340 = arith.subf %338, %339 : vector<8x128xf32>
    %341 = math.log1p %336 : vector<8x128xf32>
    %342 = arith.addf %340, %341 : vector<8x128xf32>
    %c4 = arith.constant 4 : index
    %343 = memref.load %arg11[%c4] : memref<8xf32, #tpu.memory_space<smem>>
    %cst_110 = arith.constant 0.000000e+00 : f32
    %344 = vector.broadcast %cst_110 : f32 to vector<8x128xf32>
    %345 = arith.select %187, %342, %344 : vector<8x128xi1>, vector<8x128xf32>
    %346 = vector.shape_cast %345 : vector<8x128xf32> to vector<1x8x128xf32>
    %cst_111 = arith.constant dense<0.000000e+00> : vector<1xf32>
    %347 = vector.multi_reduction <add>, %346, %cst_111 [1, 2] : vector<1x8x128xf32> to vector<1xf32>
    %348 = vector.shape_cast %347 : vector<1xf32> to vector<1x1x1xf32>
    %349 = vector.extract %348[0, 0, 0] : f32 from vector<1x1x1xf32>
    %350 = arith.addf %343, %349 : f32
    %c4_112 = arith.constant 4 : index
    %351 = memref.load %arg11[%c4_112] : memref<8xf32, #tpu.memory_space<smem>>
    memref.store %350, %arg11[%c4_112] : memref<8xf32, #tpu.memory_space<smem>>
    %352 = arith.extui %5 : i1 to i32
    %c0_i32_113 = arith.constant 0 : i32
    %353 = arith.cmpi ne, %352, %c0_i32_113 : i32
    scf.if %353 {
      %c1_114 = arith.constant 1 : index
      %354 = memref.load %arg11[%c1_114] : memref<8xf32, #tpu.memory_space<smem>>
      %cst_115 = arith.constant 1.000000e+00 : f32
      %355 = arith.maximumf %354, %cst_115 : f32
      %c2_116 = arith.constant 2 : index
      %356 = memref.load %arg11[%c2_116] : memref<8xf32, #tpu.memory_space<smem>>
      %cst_117 = arith.constant 9.99999997E-7 : f32
      %357 = arith.maximumf %356, %cst_117 : f32
      %cst_118 = arith.constant 0.000000e+00 : f32
      %358 = arith.cmpf ogt, %354, %cst_118 : f32
      %c0_119 = arith.constant 0 : index
      %359 = memref.load %arg11[%c0_119] : memref<8xf32, #tpu.memory_space<smem>>
      %360 = arith.divf %359, %355 : f32
      %c0_120 = arith.constant 0 : index
      %361 = memref.load %arg10[%c0_120] : memref<3xf32, #tpu.memory_space<smem>>
      memref.store %360, %arg10[%c0_120] : memref<3xf32, #tpu.memory_space<smem>>
      %c3_121 = arith.constant 3 : index
      %362 = memref.load %arg11[%c3_121] : memref<8xf32, #tpu.memory_space<smem>>
      %363 = arith.divf %362, %357 : f32
      %cst_122 = arith.constant 0.000000e+00 : f32
      %364 = arith.select %358, %363, %cst_122 : f32
      %c1_123 = arith.constant 1 : index
      %365 = memref.load %arg10[%c1_123] : memref<3xf32, #tpu.memory_space<smem>>
      memref.store %364, %arg10[%c1_123] : memref<3xf32, #tpu.memory_space<smem>>
      %c4_124 = arith.constant 4 : index
      %366 = memref.load %arg11[%c4_124] : memref<8xf32, #tpu.memory_space<smem>>
      %367 = arith.divf %366, %355 : f32
      %cst_125 = arith.constant 0.000000e+00 : f32
      %368 = arith.select %358, %367, %cst_125 : f32
      %c2_126 = arith.constant 2 : index
      %369 = memref.load %arg10[%c2_126] : memref<3xf32, #tpu.memory_space<smem>>
      memref.store %368, %arg10[%c2_126] : memref<3xf32, #tpu.memory_space<smem>>
    } else {
    }
    return
  }
  func.func @transform_0(%arg0: i32, %arg1: i32, %arg2: memref<24xf32, #tpu.memory_space<smem>>, %arg3: memref<6xf32, #tpu.memory_space<smem>>) -> (i32, i32, i32) {
    %c0_i32 = arith.constant 0 : i32
    %c0_i32_0 = arith.constant 0 : i32
    %c0_i32_1 = arith.constant 0 : i32
    return %c0_i32, %arg0, %c0_i32_0 : i32, i32, i32
  }
  func.func @transform_1(%arg0: i32, %arg1: i32, %arg2: memref<24xf32, #tpu.memory_space<smem>>, %arg3: memref<6xf32, #tpu.memory_space<smem>>) -> (i32, i32, i32) {
    %c0_i32 = arith.constant 0 : i32
    %c0_i32_0 = arith.constant 0 : i32
    %c0_i32_1 = arith.constant 0 : i32
    return %c0_i32, %arg0, %c0_i32_0 : i32, i32, i32
  }
  func.func @transform_2(%arg0: i32, %arg1: i32, %arg2: memref<24xf32, #tpu.memory_space<smem>>, %arg3: memref<6xf32, #tpu.memory_space<smem>>) -> (i32, i32) {
    %c0_i32 = arith.constant 0 : i32
    %c0_i32_0 = arith.constant 0 : i32
    return %arg0, %c0_i32 : i32, i32
  }
  func.func @transform_3(%arg0: i32, %arg1: i32, %arg2: memref<24xf32, #tpu.memory_space<smem>>, %arg3: memref<6xf32, #tpu.memory_space<smem>>) -> (i32, i32, i32, i32) {
    %c0_i32 = arith.constant 0 : i32
    %c0_i32_0 = arith.constant 0 : i32
    %c0_i32_1 = arith.constant 0 : i32
    return %arg1, %c0_i32, %arg0, %c0_i32_0 : i32, i32, i32, i32
  }
  func.func @transform_4(%arg0: i32, %arg1: i32, %arg2: memref<24xf32, #tpu.memory_space<smem>>, %arg3: memref<6xf32, #tpu.memory_space<smem>>) -> (i32, i32, i32, i32) {
    %c0_i32 = arith.constant 0 : i32
    %c0_i32_0 = arith.constant 0 : i32
    %c0_i32_1 = arith.constant 0 : i32
    return %arg1, %c0_i32, %arg0, %c0_i32_0 : i32, i32, i32, i32
  }
  func.func @transform_5(%arg0: i32, %arg1: i32, %arg2: memref<24xf32, #tpu.memory_space<smem>>, %arg3: memref<6xf32, #tpu.memory_space<smem>>) -> (i32, i32, i32, i32) {
    %c0_i32 = arith.constant 0 : i32
    %c0_i32_0 = arith.constant 0 : i32
    %c0_i32_1 = arith.constant 0 : i32
    return %arg1, %c0_i32, %arg0, %c0_i32_0 : i32, i32, i32, i32
  }
  func.func @transform_6(%arg0: i32, %arg1: i32, %arg2: memref<24xf32, #tpu.memory_space<smem>>, %arg3: memref<6xf32, #tpu.memory_space<smem>>) -> i32 {
    %c0_i32 = arith.constant 0 : i32
    %c0_i32_0 = arith.constant 0 : i32
    return %c0_i32 : i32
  }
}

</mosaic_0001>

<bundles_post_ra>
// kernel: tpu_custom_call.1
= control target key start
LH: loop header
LB: loop body
LE: loop exit
PB: predicated region body
PF: predicated region fallthrough
CT: control target
= control target key end

     0   :  { %s2648_s0 = inlined_call_operand.hbm [shape: f32[24], index: 0, kind: input, shape index: {}]   ;;  %s2649_s2 = inlined_call_operand.hbm [shape: f32[2,8,128], index: 2, kind: input, shape index: {}]   ;;  %s2650_s3 = inlined_call_operand.hbm [shape: f32[2,8,128], index: 3, kind: input, shape index: {}]   ;;  %s2651_s4 = inlined_call_operand.vmem [shape: f32[8,128], index: 4, kind: input, shape index: {}]   ;;  %s2652_s5 = inlined_call_operand.hbm [shape: f32[2,8,8,128], index: 5, kind: input, shape index: {}]   ;;  %s2653_s6 = inlined_call_operand.hbm [shape: f32[2,4,8,128], index: 6, kind: input, shape index: {}]   ;;  %s2654_s7 = inlined_call_operand.vmem [shape: f32[2,1,8,128], index: 7, kind: input, shape index: {}]   ;;  %s2655_s8 = inlined_call_operand.hbm [shape: f32[3], index: 8, kind: output, shape index: {}]   ;;  %s2656_s1 = inlined_call_operand.vmem [shape: f32[6], index: 1, kind: input, shape index: {}]  }
   0x1   :  { %2678 = sst [smem:[#allocation30_spill]] %s2649_s2  ;;  %s1446_s29 = scalar_lea.hbm %s2648_s0, 16 }
   0x2   :  { %2679 = sst [smem:[#allocation31_spill]] %s2652_s5  ;;  %p1447_p0 = scmp.ne.s32.totalorder %s2648_s0, %s1446_s29 }
   0x3   :  { %p1450_p1 = scmp.lt.u32.totalorder %s1446_s29, %s2648_s0 }
   0x5   :  { %p1452_p2 = pnand %p1450_p1, %p1447_p0 }
   0x7   :  { %1455 = shalt.err (!%p1452_p2)  }
   0x8   :  { %s1662_s12 = smov [#allocation4]   ;;  %s15_s17 = sshll.u32 %s2656_s1, 4  ;;  %s16_s17 = int_to_ptr.vmem [resolvable:$true] %s15_s17 }
   0x9   :  { %14 = dma.hbm_to_smem %s2648_s0, 16, %s1662_s12, [#allocation3] }
   0xa   :  { %s1456_s18 = scalar_lea.vmem %s16_s17, 16  ;;  %p1461_p4 = scmp.lt.s32.totalorder %s16_s17, %s16_s17 }
   0xb   :  { %p1457_p3 = scmp.ne.s32.totalorder %s16_s17, %s1456_s18  ;;  %p1462_p5 = scmp.lt.s32.totalorder %s1456_s18, %s1456_s18 }
   0xd   :  { %p1463_p6 = por %p1462_p5, %p1461_p4 }
   0xf   :  { %p1464_p7 = pnand %p1463_p6, %p1457_p3 }
  0x11   :  { %1467 = shalt.err (!%p1464_p7)  }
  0x12   :  { %s1663_s19 = smov [#allocation5]  }
  0x13   :  { %18 = dma.vmem_to_smem %s16_s17, 16, %s1663_s19, [#allocation3] }
  0x14   :  { %1620 = dma.done.wait [#allocation3], 32 }
  0x15   :  { %1621 = vsyncadd [#allocation3], 4294967264 }
  0x16   :  { %20 = sfence }
  0x17   :  { %21 = vsyncpa [#allocation7], 0 }
  0x18   :  { %22 = vsyncpa [#allocation10], 0 }
  0x19   :  { %23 = vsyncpa [#allocation8], 0  ;;  %s1735_s0 = smov 0   ;;  %s1737_s20 = smov 0  }
  0x1a   :  { %s1739_s1 = smov 0   ;;  %s1741_s21 = smov 0  }
  0x1b   :  { %s1743_s22 = smov 0   ;;  %s1745_s23 = smov 0  }
  0x1c LB: > { %s1764_s24 = sadd.s32 4294967295, %s1660_s23   ;;  %p135_p8 = scmp.ne.s32.totalorder %s1648_s1, %s1644_s20  ;;  %s1660_s23 = sphi %s1745_s23, %s29_s23   ;;  %s1656_s22 = sphi %s1743_s22, %s2749_s22   ;;  %s1652_s21 = sphi %s1741_s21, %s2748_s21   ;;  %s1648_s1 = sphi %s1739_s1, %s2747_s1   ;;  %s1644_s20 = sphi %s1737_s20, %s2746_s20   ;;  %s1640_s0 = sphi %s1735_s0, %s2745_s0  }
  0x1d   : > { %p136_p9 = scmp.eq.s32.totalorder %s1660_s23, 0  ;;  %p141_p10 = scmp.ne.s32.totalorder %s1644_s20, %s1640_s0 }
  0x1e   : > { %p2657_p11 = scmp.eq.s32.totalorder %s1764_s24, 0  ;;  %p1213_p13 = scmp.ge.s32.totalorder %s1660_s23, 1 }
  0x1f   : > { %p137_p12 = por %p136_p9, %p135_p8  ;;  %p229_p1 = scmp.lt.s32.totalorder %s1660_s23, 3 }
  0x20   : > { %p1775_p0 = por %p2657_p11, %p141_p10  ;;  %s1664_s28 = smov [#allocation6]  }
  0x21   : > { %p1780_p2 = pnand %p1213_p13, %p229_p1  ;;  %s243_s29 = sshll.u32 %s1664_s28, 4  ;;  %s244_s29 = int_to_ptr.vmem [resolvable:$true] %s243_s29 }
  0x22   : > { %s2680_s26 = scalar_select %p1775_p0, 1, 0 }
  0x23   : > { %s2681_s27 = scalar_select %p1780_p2, 1, 0 }
  0x24   : > { %p1300_p3 = pneg %p1780_p2  ;;  %p1316_p4 = scmp.lt.s32.totalorder %s1660_s23, 2 }
  0x25   : > { %s38_s10 = sadd.s32 1, %s1656_s22  ;;  %s2684_s2 = sld [smem:[#allocation30_spill]] }
  0x26   : > { %p1789_p5 = pnand %p1300_p3, %p2657_p11  ;;  %p1793_p6 = pnand %p1316_p4, %p137_p12 }
  0x28   : > { %s2683_s9 = scalar_select %p1793_p6, 1, 0 }
  0x29   : > { %p2664_p8 = pneg %p1789_p5 }
  0x2b   : > { %s1468_s13 = scalar_lea.hbm %s2684_s2, 256 }
  0x2c   : > { %p1469_p7 = scmp.ne.s32.totalorder %s2684_s2, %s1468_s13  ;;  %p1475_p12 = scmp.lt.u32.totalorder %s1468_s13, %s2684_s2 }
  0x2e   : > { %p1471_p9 = pnand %p2664_p8, %p1469_p7 }
  0x30   : > { %p1472_p10 = pneg %p1471_p9 }
  0x32   : > { %p1477_p13 = pnand %p1475_p12, %p1472_p10 }
  0x34   : > { %1480 = shalt.err (!%p1477_p13)
}
  0x35   : > { %s1481_s18 = scalar_lea.vmem %s244_s29, 256  ;;  %p1489_p11 = scmp.lt.s32.totalorder %s244_s29, %s244_s29 }
  0x36   : > { %p1482_p1 = scmp.ne.s32.totalorder %s244_s29, %s1481_s18  ;;  %p1490_p0 = scmp.lt.s32.totalorder %s1481_s18, %s1481_s18 }
  0x38   : > { %p1484_p3 = pnand %p1482_p1, %p2664_p8  ;;  %p1491_p2 = por %p1490_p0, %p1489_p11 }
  0x3a   : > { %p1485_p4 = pneg %p1484_p3 }
  0x3c   : > { %p1492_p6 = pnand %p1491_p2, %p1485_p4 }
  0x3e   : > { %1495 = shalt.err (!%p1492_p6)
}
  0x3f   : > { %s2661_s19 = smov 128   ;;  %s1666_s0 = smov 8  }
  0x40   : > { %1303 = dma.hbm_to_vmem [thread:$0]  (!%p1789_p5), %s2684_s2, 256, %s244_s29, [#allocation7], %s2661_s19, %s2661_s19, %s1666_s0  }
  0x41   : > { %p39_p11 = scmp.ge.s32.totalorder %s38_s10, 2  ;;  %s279_s12 = sand.u32 1, %s1660_s23  }
  0x42   : > { %s2663_s13 = sand.u32 1, %s1648_s1   ;;  %s1256_s16 = sshll.u32 %s1656_s22, 10 }
  0x43   : > { %s2751_s10 = smov (%p39_p11, %s38_s10), 0  ;;  %s1218_s14 = sshll.u32 %s2663_s13, 6 }
  0x44   : > { %2685 = sst [smem:[#allocation19_spill]] %s2751_s10  ;;  %s123_s15 = ssub.s32 %s1656_s22, %s2751_s10 }
  0x45   : > { %p126_p0 = scmp.eq.s32.totalorder %s123_s15, 0  ;;  %s2686_s5 = sld [smem:[#allocation31_spill]] }
  0x46   : > { %s283_s29 = scalar_lea.vmem [#allocation11], %s1218_s14  ;;  %s2687_s11 = sadd.s32 1, %s1648_s1 }
  0x47   : > { %s291_s28 = sshll.u32 %s283_s29, 4  ;;  %s1844_s13 = scalar_lea.sflag [#allocation7], %s279_s12  ;;  %s1842_s28 = int_to_ptr.vmem [resolvable:$true] %s291_s28 }
  0x48   : > { %s1840_s19 = scalar_select %p126_p0, %s1648_s1, %s2687_s11  }
  0x49   : > { %p2689_p6 = scmp.ne.s32.totalorder %s2683_s9, 0 }
  0x4a   : > { %2688 = sst [smem:[#allocation20_spill]] %s1840_s19 }
  0x4b   : > { %s1835_s25 = scalar_lea.hbm %s2686_s5, %s1256_s16  ;;  %p2666_p7 = pneg %p2689_p6 }
  0x4c   : > { %s1496_s15 = scalar_lea.hbm %s1835_s25, 1024  ;;  %s1501_s14 = scalar_lea.hbm %s2686_s5, 2048 }
  0x4d   : > { %p1497_p2 = scmp.ne.s32.totalorder %s1835_s25, %s1496_s15  ;;  %p1502_p12 = scmp.lt.u32.totalorder %s1835_s25, %s2686_s5 }
  0x4e   : > { %p1503_p13 = scmp.lt.u32.totalorder %s1501_s14, %s1496_s15  ;;  %p1505_p3 = scmp.lt.u32.totalorder %s1496_s15, %s1835_s25 }
  0x4f   : > { %p1499_p9 = pnand %p2666_p7, %p1497_p2 }
  0x50   : > { %p1504_p1 = por %p1503_p13, %p1502_p12 }
  0x51   : > { %p1500_p10 = pneg %p1499_p9 }
  0x52   : > { %p1506_p4 = por %p1505_p3, %p1504_p1 }
  0x54   : > { %p1507_p11 = pnand %p1506_p4, %p1500_p10 }
  0x56   : > { %1510 = shalt.err (!%p1507_p11)
}
  0x57   : > { %s1511_s12 = scalar_lea.vmem %s1842_s28, 1024  ;;  %s1667_s11 = smov [#allocation11]  }
  0x58   : > { %p1512_p0 = scmp.ne.s32.totalorder %s1842_s28, %s1511_s12  ;;  %s1516_s16 = sshll.u32 %s1667_s11, 4  ;;  %s1517_s16 = int_to_ptr.vmem [resolvable:$false] %s1516_s16 }
  0x59   : > { %s1518_s17 = scalar_lea.vmem %s1517_s16, 2048  ;;  %p1519_p8 = scmp.lt.s32.totalorder %s1842_s28, %s1517_s16 }
  0x5a   : > { %p1514_p2 = pnand %p1512_p0, %p2666_p7  ;;  %p1520_p12 = scmp.lt.s32.totalorder %s1518_s17, %s1511_s12 }
  0x5c   : > { %p1515_p9 = pneg %p1514_p2  ;;  %p1521_p13 = por %p1520_p12, %p1519_p8 }
  0x5e   : > { %p1522_p1 = pnand %p1521_p13, %p1515_p9 }
  0x60   : > { %1525 = shalt.err (!%p1522_p1)
}
  0x61   : > { %s2690_s15 = smov 128   ;;  %s1668_s14 = smov [#allocation9]  }
  0x62   : > { %1310 = dma.hbm_to_vmem [thread:$0]  (!%p2689_p6), %s1835_s25, 1024, %s1842_s28, %s1844_s13, %s2690_s15, %s2690_s15, %s1666_s0  }
  0x63   : > { %s258_s18 = sshll.u32 %s1668_s14, 4  ;;  %s2691_s29 = sand.u32 1, %s1648_s1   ;;  %s259_s18 = int_to_ptr.vmem [resolvable:$true] %s258_s18 }
  0x64   : > { %s1221_s11 = sshll.u32 %s2691_s29, 5  ;;  %s1526_s17 = scalar_lea.hbm %s2650_s3, 256 }
  0x65   : > { %p1527_p8 = scmp.ne.s32.totalorder %s2650_s3, %s1526_s17  ;;  %p2692_p10 = pneg %p1789_p5 }
  0x66   : > { %p1533_p11 = scmp.lt.u32.totalorder %s1526_s17, %s2650_s3 }
  0x67   : > { %p1529_p3 = pnand %p1527_p8, %p2692_p10 }
  0x69   : > { %p1530_p4 = pneg %p1529_p3 }
  0x6b   : > { %p1535_p0 = pnand %p1533_p11, %p1530_p4 }
  0x6d   : > { %1538 = shalt.err (!%p1535_p0)
}
  0x6e   : > { %s1539_s25 = scalar_lea.vmem %s259_s18, 256  ;;  %p2693_p9 = pmov %p2692_p10 }
  0x6f   : > { %p1540_p2 = scmp.ne.s32.totalorder %s259_s18, %s1539_s25  ;;  %p1547_p1 = scmp.lt.s32.totalorder %s259_s18, %s259_s18 }
  0x70   : > { %p1548_p7 = scmp.lt.s32.totalorder %s1539_s25, %s1539_s25 }
  0x71   : > { %p1542_p12 = pnand %p1540_p2, %p2693_p9 }
  0x72   : > { %p1549_p6 = por %p1548_p7, %p1547_p1 }
  0x73   : > { %p1543_p13 = pneg %p1542_p12 }
  0x75   : > { %p1550_p8 = pnand %p1549_p6, %p1543_p13 }
  0x77   : > { %1553 = shalt.err (!%p1550_p8)
}
  0x78   : > { %1306 = dma.hbm_to_vmem [thread:$0]  (!%p1789_p5), %s2650_s3, 256, %s259_s18, [#allocation10], %s2690_s15, %s2690_s15, %s1666_s0  }
  0x79   : > { %s1257_s10 = sshll.u32 %s1656_s22, 9  ;;  %s305_s19 = scalar_lea.vmem [#allocation12], %s1221_s11 }
  0x7a   : > { %s313_s28 = sshll.u32 %s305_s19, 4  ;;  %s1904_s12 = scalar_lea.hbm %s2653_s6, %s1257_s10  ;;  %s1906_s28 = int_to_ptr.vmem [resolvable:$true] %s313_s28 }
  0x7b   : > { %s1554_s30 = scalar_lea.hbm %s1904_s12, 512  ;;  %p2694_p7 = scmp.ne.s32.totalorder %s2683_s9, 0 }
  0x7c   : > { %p1555_p6 = scmp.ne.s32.totalorder %s1904_s12, %s1554_s30  ;;  %s1559_s16 = scalar_lea.hbm %s2653_s6, 1024 }
  0x7d   : > { %p2695_p10 = pneg %p2694_p7  ;;  %p1560_p4 = scmp.lt.u32.totalorder %s1904_s12, %s2653_s6 }
  0x7e   : > { %p1561_p11 = scmp.lt.u32.totalorder %s1559_s16, %s1554_s30  ;;  %p1563_p2 = scmp.lt.u32.totalorder %s1554_s30, %s1904_s12 }
  0x7f   : > { %p1557_p3 = pnand %p1555_p6, %p2695_p10 }
  0x80   : > { %p1562_p0 = por %p1561_p11, %p1560_p4 }
  0x81   : > { %p1558_p5 = pneg %p1557_p3 }
  0x82   : > { %p1564_p9 = por %p1563_p2, %p1562_p0 }
  0x84   : > { %p1565_p12 = pnand %p1564_p9, %p1558_p5 }
  0x86   : > { %1568 = shalt.err (!%p1565_p12)
}
  0x87   : > { %s1569_s2 = scalar_lea.vmem %s1906_s28, 512  ;;  %p2696_p1 = pmov %p2695_p10 }
  0x88   : > { %p1570_p13 = scmp.ne.s32.totalorder %s1906_s28, %s1569_s2  ;;  %s1669_s5 = smov [#allocation12]  }
  0x89   : > { %s1574_s10 = sshll.u32 %s1669_s5, 4  ;;  %s1575_s10 = int_to_ptr.vmem [resolvable:$false] %s1574_s10 }
  0x8a   : > { %p1572_p8 = pnand %p1570_p13, %p2696_p1  ;;  %s1576_s19 = scalar_lea.vmem %s1575_s10, 1024 }
  0x8b   : > { %p1577_p10 = scmp.lt.s32.totalorder %s1906_s28, %s1575_s10  ;;  %p1578_p3 = scmp.lt.s32.totalorder %s1576_s19, %s1569_s2 }
  0x8c   : > { %p1573_p6 = pneg %p1572_p8 }
  0x8d   : > { %p1579_p4 = por %p1578_p3, %p1577_p10 }
  0x8f   : > { %p1580_p11 = pnand %p1579_p4, %p1573_p6 }
  0x91   : > { %1583 = shalt.err (!%p1580_p11)
}
  0x92   : > { %1313 = dma.hbm_to_vmem [thread:$0]  (!%p2694_p7), %s1904_s12, 512, %s1906_s28, %s1844_s13, %s2690_s15, %s2690_s15, %s1666_s0  }
  0x93   : > { %p2697_p5 = scmp.ne.s32.totalorder %s2681_s27, 0 }
  0x95   : > { %335 = sbr.rel (%p2697_p5) target bundleno = 593 (0x251), region = 44 }
  0x9c   : > { %p2698_p0 = scmp.eq.s32.totalorder %s1764_s24, 0 }
  0x9e   : > { %1623 = dma.done.wait (%p2698_p0), [#allocation7], 256   ;;  %p2699_p2 = pmov %p2698_p0 }
  0x9f   : > { %p2700_p9 = pmov %p2698_p0 }
  0xa0   : > { %1625 = vsyncadd (%p2699_p2), [#allocation7], 4294967040 }
  0xa1   : > { %1627 = dma.done.wait (%p2700_p9), [#allocation10], 256   ;;  %p2701_p12 = pmov %p2698_p0 }
  0xa2   : > { %s345_s9 = sand.u32 1, %s1764_s24   ;;  %s347_s0 = sand.u32 1, %s1644_s20  }
  0xa3   : > { %1629 = vsyncadd (%p2701_p12), [#allocation10], 4294967040  ;;  %s1227_s27 = sshll.u32 %s347_s0, 6  ;;  %s346_s13 = scalar_lea.sflag [#allocation7], %s345_s9 }
  0xa4   : > { %s1949_s15 = scalar_lea.vmem [#allocation11], %s1227_s27  ;;  %p2702_p7 = scmp.ne.s32.totalorder %s2680_s26, 0 }
  0xa6   : > { %1631 = dma.done.wait (%p2702_p7), %s346_s13, 1536  }
  0xa7   : > { %1633 = vsyncadd (%p2702_p7), %s346_s13, 4294965760  ;;  %s1956_s28 = smul.u32 12, %s1652_s21  ;;  %v1970_v0 = vld [vmem:[#allocation6] sm:$0xff]  ;;  %v1972_v1 = vld [vmem:[#allocation6 + $0x8] sm:$0xff]  ;;  %p402_p13 = scmp.lt.s32.totalorder %s1652_s21, 1 }
  0xa8   : > { %s1997_s13 = smul.u32 3, %s1652_s21  ;;  %v2028_v17 = vld [vmem:[#allocation9] sm:$0xff]  ;;  %v2030_v18 = vld [vmem:[#allocation9 + $0x8] sm:$0xff]  ;;  %v2055_v27 = vld [vmem:[%s1949_s15] sm:$0xff]  ;;  %p413_p1 = scmp.eq.s32.totalorder %s1652_s21, 1 }
  0xa9   : > { %s1959_s14 = sld [smem:[#allocation4 + %s1956_s28]]  ;;  %s443_s29 = sadd.s32 1, %s1956_s28  ;;  %v2076_v32 = vld [vmem:[%s1949_s15 + $0x8] sm:$0xff]  ;;  %v2079_v33 = vld [vmem:[%s1949_s15 + $0x10] sm:$0xff]  ;;  %v2087_v35 = vld [vmem:[%s1949_s15 + $0x18] sm:$0xff] }
  0xaa   : > { %s1962_s12 = sld [smem:[#allocation4 + %s443_s29]]  ;;  %s445_s26 = sadd.s32 2, %s1956_s28  ;;  %v2090_v36 = vld [vmem:[%s1949_s15 + $0x20] sm:$0xff]  ;;  %v617_v37 = vand.u32 2147483647, %v2055_v27  ;;  %v2109_v46 = vld [vmem:[%s1949_s15 + $0x28] sm:$0xff] }
  0xab   : > { %s1965_s30 = sld [smem:[#allocation4 + %s445_s26]]  ;;  %s447_s18 = sadd.s32 3, %s1956_s28  ;;  %v618_v43 = vand.u32 2147483647, %v2076_v32  ;;  %v619_v44 = vand.u32 2147483647, %v2079_v33 }
  0xac   : > { %s448_s11 = sld [smem:[#allocation4 + %s447_s18]]  ;;  %s483_s16 = sadd.s32 4, %s1956_s28  ;;  %v620_v47 = vand.u32 2147483647, %v2087_v35  ;;  %v621_v48 = vand.u32 2147483647, %v2090_v36 }
  0xad   : > { %s485_s17 = sadd.s32 5, %s1956_s28  ;;  %s1974_s25 = sld [smem:[#allocation4 + %s483_s16]]  ;;  %v2120_v50 = vld [vmem:[%s1949_s15 + $0x30] sm:$0xff]  ;;  %v2131_v55 = vld [vmem:[%s1949_s15 + $0x38] sm:$0xff]  ;;  %v622_v61 = vand.u32 2147483647, %v2109_v46 }
  0xae   : > { %s1976_s2 = sld [smem:[#allocation4 + %s485_s17]]  ;;  %s487_s5 = sadd.s32 6, %s1956_s28 }
  0xaf   : > { %v451_v2 = vstv %s1959_s14  ;;  %s489_s10 = sadd.s32 7, %s1956_s28  ;;  %s1985_s19 = sld [smem:[#allocation4 + %s487_s5]] }
  0xb0   : > { %v1982_v3 = vsub.f32 %v1970_v0, %v451_v2  ;;  %v453_v4 = vstv %s1962_s12  ;;  %s1987_s9 = sld [smem:[#allocation4 + %s489_s10]]  ;;  %s525_s26 = sadd.s32 8, %s1956_s28 }
  0xb1   : > { %v1990_v5 = vsub.f32 %v1972_v1, %v453_v4  ;;  %v455_v6 = vstv %s1965_s30  ;;  %s469_s27 = ssub.f32 %s1965_s30, %s1959_s14  ;;  %s527_s18 = sadd.s32 9, %s1956_s28  ;;  %v623_v4 = vand.u32 2147483647, %v2120_v50 }
  0xb2   : > { %v2000_v7 = vsub.f32 %v455_v6, %v1970_v0  ;;  %v457_v8 = vstv %s448_s11  ;;  %s470_s29 = ssub.f32 %s448_s11, %s1962_s12  ;;  %s2016_s30 = sld [smem:[#allocation4 + %s525_s26]] }
  0xb3   : > { %v2004_v9 = vsub.f32 %v457_v8, %v1972_v1  ;;  %v493_v12 = vstv %s1974_s25  ;;  %s2025_s12 = sld [smem:[#allocation4 + %s527_s18]]  ;;  %s529_s11 = sadd.s32 10, %s1956_s28 }
  0xb4   : > { %v459_v10 = vmin.f32 %v1982_v3, %v2000_v7  ;;  %v462_v11 = vmax.f32 %v1982_v3, %v2000_v7  ;;  %s2012_s14 = smul.f32 %s470_s29, %s469_s27  ;;  %v495_v13 = vstv %s1976_s2  ;;  %v2023_v16 = vsub.f32 %v1970_v0, %v493_v12  ;;  %s491_s16 = sadd.s32 1, %s1997_s13 }
  0xb5   : > { %v460_v14 = vmin.f32 %v1990_v5, %v2004_v9  ;;  %v463_v15 = vmax.f32 %v1990_v5, %v2004_v9  ;;  %v2034_v19 = vsub.f32 %v1972_v1, %v495_v13  ;;  %v497_v20 = vstv %s1985_s19  ;;  %s2038_s17 = sld [smem:[#allocation4 + %s529_s11]]  ;;  %s511_s5 = ssub.f32 %s1985_s19, %s1974_s25 }
  0xb6   : > { %v499_v21 = vstv %s1987_s9  ;;  %v2041_v24 = vsub.f32 %v497_v20, %v1970_v0  ;;  %s531_s10 = sadd.s32 11, %s1956_s28  ;;  %v473_v26 = vstv %s2012_s14  ;;  %s512_s27 = ssub.f32 %s1987_s9, %s1976_s2 }
  0xb7   : > { %v461_v22 = vmin.f32 %v459_v10, %v460_v14  ;;  %v464_v23 = vmax.f32 %v462_v11, %v463_v15  ;;  %v2044_v25 = vsub.f32 %v499_v21, %v1972_v1  ;;  %s2052_s29 = sld [smem:[#allocation4 + %s531_s10]]  ;;  %s2084_s2 = sshll.u32 %s347_s0, 5  ;;  %v624_v14 = vand.u32 2147483647, %v2131_v55 }
  0xb8   : > { %s2058_s26 = sld [smem:[#allocation5 + %s1997_s13]]  ;;  %v501_v28 = vmin.f32 %v2023_v16, %v2041_v24  ;;  %v504_v30 = vmax.f32 %v2023_v16, %v2041_v24  ;;  %v535_v34 = vstv %s2016_s30  ;;  %s2093_s19 = smul.f32 %s512_s27, %s511_s5  ;;  %v625_v15 = vsub.f32 0.0, %v617_v37 }
  0xb9   : > { %vm465_vm0 = vcmp.gt.f32.partialorder %v461_v22, 0.0  ;;  %vm466_vm1 = vcmp.ge.f32.partialorder %v464_v23, %v2028_v17  ;;  %vm467_vm2 = vcmp.le.f32.partialorder %v464_v23, %v2030_v18  ;;  %s2062_s28 = sld [smem:[#allocation5 + %s491_s16]]  ;;  %v502_v29 = vmin.f32 %v2034_v19, %v2044_v25  ;;  %s533_s0 = sadd.s32 2, %s1997_s13 }
  0xba   : > { %vm468_vm3 = vmand %vm466_vm1, %vm467_vm2  ;;  %v505_v31 = vmax.f32 %v2034_v19, %v2044_v25  ;;  %s403_s25 = scalar_select %p402_p13, %s1652_s21, 1  ;;  %v537_v41 = vstv %s2025_s12  ;;  %v2104_v45 = vsub.f32 %v1970_v0, %v535_v34  ;;  %v515_v51 = vstv %s2093_s19 }
  0xbb   : > { %vm472_vm4 = vmand %vm465_vm0, %vm468_vm3  ;;  %v503_v39 = vmin.f32 %v501_v28, %v502_v29  ;;  %v539_v42 = vstv %s2038_s17  ;;  %s553_s16 = ssub.f32 %s2038_s17, %s2016_s30  ;;  %v2115_v49 = vsub.f32 %v1972_v1, %v537_v41  ;;  %s2135_s5 = sld [smem:[#allocation5 + %s533_s0]]  ;;  %v627_v34 = vsub.f32 0.0, %v619_v44 }
  0xbc   : > { %v474_v38 = vsel %vm472_vm4, %v473_v26, 1e+08  ;;  %v506_v40 = vmax.f32 %v504_v30, %v505_v31  ;;  %s1229_s9 = sshll.u32 %s403_s25, 3  ;;  %v2125_v52 = vsub.f32 %v539_v42, %v1970_v0  ;;  %v626_v31 = vsub.f32 0.0, %v618_v43  ;;  %v440_v42 = vld [vmem:[%s2651_s4] sm:$0xff]  ;;  %p410_p8 = scmp.eq.s32.totalorder %s1652_s21, 0 }
  0xbd   : > { %s408_s11 = scalar_lea.vmem %s2654_s7, %s1229_s9  ;;  %vm475_vm5 = vcmp.lt.f32.partialorder %v474_v38, 1e+08  ;;  %vm507_vm6 = vcmp.gt.f32.partialorder %v503_v39, 0.0  ;;  %s554_s13 = ssub.f32 %s2052_s29, %s2025_s12  ;;  %v541_v53 = vstv %s2052_s29  ;;  %v628_v39 = vsub.f32 0.0, %v620_v47 }
  0xbe   : > { %vm508_vm7 = vcmp.ge.f32.partialorder %v506_v40, %v2028_v17  ;;  %vm509_vm8 = vcmp.le.f32.partialorder %v506_v40, %v2030_v18  ;;  %v2128_v54 = vld [vmem:[%s408_s11] sm:$0xff]  ;;  %v481_v56 = vstv %s2058_s26  ;;  %v542_v58 = vsub.f32 %v541_v53, %v1972_v1  ;;  %s358_s12 = scalar_lea.vmem [#allocation12], %s2084_s2  ;;  %s1671_s10 = smov 0.0  }
  0xbf   : > { %2703 = vst [vmem:[#allocation21_spill] sm:$0xff] %v2128_v54  ;;  %vm510_vm9 = vmand %vm508_vm7, %vm509_vm8  ;;  %v523_v57 = vstv %s2062_s28  ;;  %v2139_v59 = vld [vmem:[%s358_s12] sm:$0xff]  ;;  %v2141_v60 = vld [vmem:[%s358_s12 + $0x10] sm:$0xff]  ;;  %v476_v62 = vsel %vm475_vm5, %v474_v38, 1e+08  ;;  %v543_v63 = vmin.f32 %v2104_v45, %v2125_v52  ;;  %v546_v0 = vmax.f32 %v2104_v45, %v2125_v52  ;;  %s2160_s15 = smul.f32 %s554_s13, %s553_s16  ;;  %1289 = sst [smem:[#allocation2 + $0x1]] (%p410_p8), %s1671_s10 }
  0xc0   : > { %vm514_vm10 = vmand %vm507_vm6, %vm510_vm9  ;;  %v2150_v2 = vld [vmem:[%s358_s12 + $0x8] sm:$0xff]  ;;  %v2152_v1 = vld [vmem:[%s358_s12 + $0x18] sm:$0xff]  ;;  %v544_v8 = vmin.f32 %v2115_v49, %v542_v58  ;;  %v547_v10 = vmax.f32 %v2115_v49, %v542_v58  ;;  %v1009_v11 = vand.u32 2147483647, %v2128_v54  ;;  %v477_v12 = vsel %vm475_vm5, %v1982_v3, 0.0  ;;  %1293 = sst [smem:[#allocation13]] (%p410_p8), %s1671_s10 }
  0xc1   : > { %v516_v6 = vsel %vm514_vm10, %v515_v51, 1e+08  ;;  %v964_v13 = vadd.f32 %v2141_v60, %v2139_v59  ;;  %v478_v20 = vsel %vm475_vm5, %v1990_v5, 0.0  ;;  %v479_v21 = vsel %vm475_vm5, %v2000_v7, 0.0  ;;  %1294 = sst [smem:[#allocation13 + $0x1]] (%p410_p8), %s1671_s10  ;;  %s1232_s27 = sld [smem:[#allocation2 + $0x1]] }
  0xc2   : > { %v480_v22 = vsel %vm475_vm5, %v2004_v9, 0.0  ;;  %v965_v23 = vadd.f32 %v2152_v1, %v2150_v2  ;;  %v482_v3 = vsel %vm475_vm5, %v481_v56, 8.0  ;;  %vm2177_vm11 = vcmp.lt.f32.partialorder %v516_v6, %v476_v62  ;;  %1295 = sst [smem:[#allocation13 + $0x2]] (%p410_p8), %s1671_s10  ;;  %s1672_s30 = smov (%p413_p1), 1.0  }
  0xc3   : > { %v545_v28 = vmin.f32 %v543_v63, %v544_v8  ;;  %v548_v29 = vmax.f32 %v546_v0, %v547_v10  ;;  %v557_v30 = vstv %s2160_s15  ;;  %v1010_v5 = vsub.f32 0.0, %v1009_v11  ;;  %1288 = sst [smem:[#allocation2]] (%p410_p8), %s1671_s10 }
  0xc4   : > { %v633_v7 = vmul.f32 1.442695, %v625_v15  ;;  %v518_v9 = vsel %vm2177_vm11, %v516_v6, %v476_v62  ;;  %v565_v37 = vstv %s2135_s5  ;;  %v966_v38 = vmul.f32 %v965_v23, %v964_v13  ;;  %1290 = sst [smem:[#allocation2 + $0x2]] (%p410_p8), %s1671_s10  ;;  %s873_s28 = sld [smem:[#allocation2]] }
  0xc5   : > { %vm549_vm12 = vcmp.gt.f32.partialorder %v545_v28, 0.0  ;;  %vm550_vm13 = vcmp.ge.f32.partialorder %v548_v29, %v2028_v17  ;;  %vm551_vm14 = vcmp.le.f32.partialorder %v548_v29, %v2030_v18  ;;  %v519_v40 = vsel %vm2177_vm11, %v2023_v16, %v477_v12  ;;  %1291 = sst [smem:[#allocation2 + $0x3]] (%p410_p8), %s1671_s10  ;;  %s1242_s25 = sld [smem:[#allocation2 + $0x2]] }
  0xc6   : > { %vm552_vm15 = vmand %vm550_vm13, %vm551_vm14  ;;  %v520_v41 = vsel %vm2177_vm11, %v2034_v19, %v478_v20  ;;  %v521_v17 = vsel %vm2177_vm11, %v2041_v24, %v479_v21  ;;  %v629_v18 = vsub.f32 0.0, %v621_v48  ;;  %v522_v16 = vsel %vm2177_vm11, %v2044_v25, %v480_v22  ;;  %1292 = sst [smem:[#allocation2 + $0x4]] (%p410_p8), %s1671_s10  ;;  %s1246_s2 = sld [smem:[#allocation2 + $0x3]] }
  0xc7   : > { %vm556_vm0 = vmand %vm549_vm12, %vm552_vm15  ;;  %v524_v43 = vsel %vm2177_vm11, %v523_v57, %v482_v3  ;;  %v1011_v44 = vmul.f32 1.442695, %v1010_v5  ;;  %1380 = vpow2.f32 %v633_v7  ;;  %v635_v24 = vmul.f32 1.442695, %v626_v31  ;;  %s1247_s19 = sld [smem:[#allocation2 + $0x4]] }
  0xc8   : > { %v558_v19 = vsel %vm556_vm0, %v557_v30, 1e+08  ;;  %v637_v47 = vmul.f32 1.442695, %v627_v34  ;;  %v2706_v25 = vmov 0  ;;  %v1670_v0 = vmov 0.0  }
  0xc9   : > { %vm559_vm1 = vcmp.lt.f32.partialorder %v558_v19, %v518_v9  ;;  %v630_v10 = vsub.f32 0.0, %v622_v61  ;;  %1382 = vpow2.f32 %v635_v24  ;;  %vm673_vm13 = vcmp.ge.f32.partialorder %v2055_v27, 0.0  ;;  %s1673_s10 = smov (%p413_p1), 1e-06  }
  0xca   : > { %v560_v51 = vsel %vm559_vm1, %v558_v19, %v518_v9  ;;  %v561_v48 = vsel %vm559_vm1, %v2104_v45, %v519_v40  ;;  %v562_v53 = vsel %vm559_vm1, %v2115_v49, %v520_v41  ;;  %v563_v56 = vsel %vm559_vm1, %v2125_v52, %v521_v17 }
  0xcb   : > { %v564_v62 = vsel %vm559_vm1, %v542_v58, %v522_v16  ;;  %v566_v63 = vsel %vm559_vm1, %v565_v37, %v524_v43  ;;  %vm2209_vm2 = vcmp.lt.f32.partialorder %v560_v51, 1e+08  ;;  %v2213_v57 = vmul.f32 %v561_v48, %v440_v42 }
  0xcc   : > { %v2707_v25 = vsel %vm2209_vm2, 4294967295, %v2706_v25  ;;  %v1233_v6 = vsel %vm2209_vm2, 1.0, %v1670_v0  ;;  %v583_v45 = vsel %vm2209_vm2, %v566_v63, 8.0  ;;  %v2220_v8 = vmul.f32 %v562_v53, %v440_v42 }
  0xcd   : > { %2708 = vst [vmem:[#allocation22_spill] sm:$0xff] %v2707_v25  ;;  %v2222_v49 = vmul.f32 %v563_v56, %v440_v42  ;;  %v2224_v52 = vmul.f32 %v564_v62, %v440_v42  ;;  %571 = vadd.xlane.f32.xlu0 %v1233_v6  ;;  %v967_v58 = vmin.f32 %v2139_v59, %v2213_v57  ;;  %1384 = vpow2.f32 %v637_v47 }
  0xce   : > { %v1262_v15 = vtrunc.f32 %v583_v45  ;;  %v973_v61 = vmax.f32 %v2139_v59, %v2213_v57  ;;  %v971_v26 = vmin.f32 %v2150_v2, %v2220_v8  ;;  %v977_v31 = vmax.f32 %v2150_v2, %v2220_v8 }
  0xcf   : > { %v922_v11 = vmax.f32 %v2213_v57, %v2222_v49  ;;  %v961_v12 = vadd.f32 %v2222_v49, %v2213_v57  ;;  %v968_v13 = vmin.f32 %v2141_v60, %v2222_v49  ;;  %v924_v20 = vmax.f32 %v2220_v8, %v2224_v52 }
  0xd0   : > { %v962_v21 = vadd.f32 %v2224_v52, %v2220_v8  ;;  %v970_v3 = vmin.f32 %v2152_v1, %v2224_v52  ;;  %v974_v30 = vmax.f32 %v2141_v60, %v2222_v49  ;;  %v976_v5 = vmax.f32 %v2152_v1, %v2224_v52 }
  0xd1   : > { %v925_v22 = vsel %vm2209_vm2, %v922_v11, 1.0  ;;  %v969_v23 = vadd.f32 %v968_v13, %v967_v58  ;;  %v926_v28 = vsel %vm2209_vm2, %v924_v20, 1.0  ;;  %v2256_v34 = vpop.eup %1380  ;;  %v631_v37 = vsub.f32 0.0, %v623_v4 }
  0xd2   : > { %1386 = vrcp.f32 %v925_v22  ;;  %v963_v29 = vmul.f32 %v962_v21, %v961_v12  ;;  %v972_v59 = vadd.f32 %v971_v26, %v970_v3  ;;  %v975_v7 = vadd.f32 %v974_v30, %v973_v61 }
  0xd3   : > { %1388 = vrcp.f32 %v926_v28  ;;  %v632_v40 = vsub.f32 0.0, %v624_v14  ;;  %v1263_v41 = vcvt.f32.s32 %v1262_v15  ;;  %v978_v60 = vadd.f32 %v977_v31, %v976_v5  ;;  %v2264_v2 = vpop.eup %1382 }
  0xd4   : > { %v982_v9 = vadd.f32 %v966_v38, %v963_v29  ;;  %v981_v17 = vmul.f32 %v972_v59, %v969_v23  ;;  %v639_v42 = vmul.f32 1.442695, %v628_v39  ;;  %1390 = vpow2.f32 %v1011_v44 }
  0xd5   : > { %v979_v16 = vmul.f32 %v978_v60, %v975_v7  ;;  %v641_v43 = vmul.f32 1.442695, %v629_v18  ;;  %v921_v38 = vmin.f32 %v2213_v57, %v2222_v49  ;;  %v643_v19 = vmul.f32 1.442695, %v630_v10 }
  0xd6   : > { %v2262_v1 = vsub.f32 %v982_v9, %v981_v17  ;;  %v645_v24 = vmul.f32 1.442695, %v631_v37  ;;  %v647_v4 = vmul.f32 1.442695, %v632_v40  ;;  %v923_v14 = vmin.f32 %v2220_v8, %v2224_v52 }
  0xd7   : > { %v2268_v47 = vpop.eup %1384  ;;  %v2272_v51 = vadd.f32 1e-07, %v979_v16  ;;  %vm585_vm3 = vcmp.eq.s32.totalorder %v1263_v41, 0  ;;  %vm586_vm4 = vcmp.eq.s32.totalorder %v1263_v41, 1  ;;  %vm587_vm5 = vcmp.eq.s32.totalorder %v1263_v41, 2 }
  0xd8   : > { %v985_v39 = vadd.f32 1.0, %v2262_v1  ;;  %vm588_vm6 = vcmp.eq.s32.totalorder %v1263_v41, 3  ;;  %1392 = vpow2.f32 %v639_v42  ;;  %vm589_vm7 = vcmp.eq.s32.totalorder %v1263_v41, 4 }
  0xd9   : > { %vm590_vm8 = vcmp.eq.s32.totalorder %v1263_v41, 5  ;;  %vm591_vm9 = vcmp.eq.s32.totalorder %v1263_v41, 6  ;;  %v984_v44 = vadd.f32 1.0, %v981_v17  ;;  %vm592_vm10 = vcmp.eq.s32.totalorder %v1263_v41, 7 }
  0xda   : > { %1394 = vrcp.f32 %v985_v39  ;;  %v2277_v48 = vsel %vm585_vm3, 1.0, %v1670_v0  ;;  %v2280_v62 = vsel %vm586_vm4, 1.0, %v1670_v0  ;;  %v649_v63 = vadd.f32 1.0, %v2256_v34 }
  0xdb   : > { %1396 = vrcp.f32 %v2272_v51  ;;  %2709 = vst [vmem:[#allocation23_spill] sm:$0xff] %v2280_v62  ;;  %v2285_v6 = vsel %vm587_vm5, 1.0, %v1670_v0  ;;  %v650_v45 = vadd.f32 1.0, %v2264_v2  ;;  %v2290_v8 = vsel %vm588_vm6, 1.0, %v1670_v0 }
  0xdc   : > { %v1387_v18 = vpop.eup %1386  ;;  %1398 = vpow2.f32 %v641_v43  ;;  %2710 = vst [vmem:[#allocation24_spill] sm:$0xff] %v2285_v6  ;;  %2711 = vst [vmem:[#allocation25_spill] sm:$0xff] %v2290_v8  ;;  %v2294_v49 = vsel %vm589_vm7, 1.0, %v1670_v0  ;;  %v2297_v52 = vadd.f32 1.0, %v2268_v47  ;;  %v2301_v10 = vsel %vm590_vm8, 1.0, %v1670_v0 }
  0xdd   : > { %v1389_v53 = vpop.eup %1388  ;;  %v928_v56 = vmul.f32 %v1387_v18, %v921_v38  ;;  %1400 = vpow2.f32 %v643_v19  ;;  %2712 = vst [vmem:[#allocation26_spill] sm:$0xff] %v2294_v49  ;;  %2713 = vst [vmem:[#allocation27_spill] sm:$0xff] %v2301_v10  ;;  %v2305_v11 = vsel %vm591_vm9, 1.0, %v1670_v0  ;;  %v988_v13 = vsub.f32 %v2272_v51, %v2262_v1 }
  0xde   : > { %v930_v57 = vmul.f32 %v1389_v53, %v923_v14  ;;  %1402 = vpow2.f32 %v645_v24  ;;  %v2307_v12 = vpop.eup %1390  ;;  %v2313_v15 = vsel %vm592_vm10, 1.0, %v1670_v0  ;;  %v697_v20 = vmax.f32 %v2055_v27, 0.0 }
  0xdf   : > { %1404 = vpow2.f32 %v647_v4  ;;  %2714 = vst [vmem:[#allocation28_spill] sm:$0xff] %v2307_v12  ;;  %v698_v61 = vmax.f32 %v2076_v32, 0.0  ;;  %v699_v22 = vmax.f32 %v2079_v33, 0.0  ;;  %v700_v23 = vmax.f32 %v2087_v35, 0.0 }
  0xe0   : > { %v931_v58 = vmul.f32 %v930_v57, %v928_v56  ;;  %1406 = vrcp.f32 %v649_v63  ;;  %v701_v3 = vmax.f32 %v2090_v36, 0.0  ;;  %v705_v0 = vmul.f32 %v2277_v48, %v2055_v27 }
  0xe1   : > { %1408 = vrcp.f32 %v650_v45  ;;  %v702_v28 = vmax.f32 %v2109_v46, 0.0  ;;  %v703_v29 = vmax.f32 %v2120_v50, 0.0  ;;  %v704_v30 = vmax.f32 %v2131_v55, 0.0 }
  0xe2   : > { %v2316_v21 = vmax.f32 %v931_v58, 0.0  ;;  %1410 = vrcp.f32 %v2297_v52  ;;  %v2325_v26 = vpop.eup %1392  ;;  %v706_v31 = vmul.f32 %v2280_v62, %v2076_v32  ;;  %v707_v7 = vmul.f32 %v2285_v6, %v2079_v33 }
  0xe3   : > { %v652_v5 = vadd.f32 1.0, %v2325_v26  ;;  %v708_v9 = vmul.f32 %v2290_v8, %v2087_v35  ;;  %v709_v40 = vmul.f32 %v2294_v49, %v2090_v36  ;;  %v710_v41 = vmul.f32 %v2301_v10, %v2109_v46 }
  0xe4   : > { %1412 = vrsqrt.f32 %v2316_v21  ;;  %v1395_v59 = vpop.eup %1394  ;;  %v711_v60 = vmul.f32 %v2305_v11, %v2120_v50  ;;  %v712_v17 = vmul.f32 %v2313_v15, %v2131_v55  ;;  %v2348_v43 = vsub.f32 %v697_v20, %v705_v0 }
  0xe5   : > { %v1397_v37 = vpop.eup %1396  ;;  %v987_v16 = vmul.f32 %v1395_v59, %v984_v44  ;;  %1414 = vrcp.f32 %v652_v5  ;;  %vm935_vm11 = vcmp.eq.f32.partialorder %v2316_v21, inf  ;;  %vm937_vm12 = vcmp.eq.f32.partialorder %v2316_v21, 0.0 }
  0xe6   : > { %v2346_v42 = vpop.eup %1398  ;;  %v990_v1 = vmul.f32 %v1397_v37, %v988_v13  ;;  %1416 = vlog2.f32 %v649_v63  ;;  %v938_v4 = vand.u32 2147483648, %v2316_v21  ;;  %v2362_v51 = vsub.f32 %v698_v61, %v706_v31 }
  0xe7   : > { %v2350_v38 = vpop.eup %1400  ;;  %v653_v19 = vadd.f32 1.0, %v2346_v42  ;;  %1418 = vlog2.f32 %v650_v45  ;;  %vm674_vm14 = vcmp.ge.f32.partialorder %v2076_v32, 0.0  ;;  %vm675_vm15 = vcmp.ge.f32.partialorder %v2079_v33, 0.0 }
  0xe8   : > { %v2355_v24 = vpop.eup %1402  ;;  %v2359_v14 = vadd.f32 1.0, %v2350_v38  ;;  %v724_v44 = vmul.f32 -0.5, %v2256_v34  ;;  %v727_v53 = vand.u32 2147483647, %v2256_v34  ;;  %v991_v63 = vsub.f32 %v987_v16, %v990_v1 }
  0xe9   : > { %v2364_v39 = vpop.eup %1404  ;;  %v2367_v18 = vadd.f32 1.0, %v2355_v24  ;;  %1420 = vrcp.f32 %v653_v19  ;;  %v733_v45 = vmul.f32 -0.5, %v2264_v2  ;;  %vm676_vm0 = vcmp.ge.f32.partialorder %v2087_v35, 0.0 }
  0xea   : > { %v1407_v56 = vpop.eup %1406  ;;  %v2374_v57 = vadd.f32 1.0, %v2364_v39  ;;  %1422 = vrcp.f32 %v2359_v14  ;;  %v2380_v13 = vsub.f32 %v699_v22, %v707_v7  ;;  %v2382_v20 = vsub.f32 %v700_v23, %v708_v9 }
  0xeb   : > { %v1409_v58 = vpop.eup %1408  ;;  %1424 = vrcp.f32 %v2367_v18  ;;  %v2384_v61 = vsub.f32 %v701_v3, %v709_v40  ;;  %v2387_v59 = vsub.f32 %v702_v28, %v710_v41  ;;  %v2389_v31 = vsub.f32 %v703_v29, %v711_v60 }
  0xec   : > { %v1411_v0 = vpop.eup %1410  ;;  %1426 = vrcp.f32 %v2374_v57  ;;  %v2391_v37 = vsub.f32 %v704_v30, %v712_v17  ;;  %v725_v1 = vadd.f32 1.0, %v724_v44  ;;  %vm2393_vm1 = vcmp.lt.f32.partialorder %v727_v53, 0.0004427343 }
  0xed   : > { %1428 = vlog2.f32 %v2297_v52  ;;  %v742_v22 = vmul.f32 -0.5, %v2268_v47  ;;  %v993_v3 = vsub.f32 1.0, %v991_v63  ;;  %v681_v28 = vmul.f32 %v1407_v56, %v2256_v34 }
  0xee   : > { %v1413_v16 = vpop.eup %1412  ;;  %v734_v7 = vadd.f32 1.0, %v733_v45  ;;  %v682_v29 = vmul.f32 %v1409_v58, %v2264_v2  ;;  %v736_v30 = vand.u32 2147483647, %v2264_v2  ;;  %v745_v9 = vand.u32 2147483647, %v2268_v47 }
  0xef   : > { %v934_v23 = vmul.f32 %v1413_v16, %v2316_v21  ;;  %1430 = vlog2.f32 %v652_v5  ;;  %v1415_v40 = vpop.eup %1414  ;;  %v683_v41 = vmul.f32 %v1411_v0, %v2268_v47  ;;  %v751_v60 = vmul.f32 -0.5, %v2325_v26 }
  0xf0   : > { %1432 = vlog2.f32 %v653_v19  ;;  %v1417_v17 = vpop.eup %1416  ;;  %vm677_vm3 = vcmp.ge.f32.partialorder %v2090_v36, 0.0  ;;  %vm678_vm4 = vcmp.ge.f32.partialorder %v2109_v46, 0.0  ;;  %v743_v53 = vadd.f32 1.0, %v742_v22 }
  0xf1   : > { %v936_v52 = vsel %vm935_vm11, %v2316_v21, %v934_v23  ;;  %v754_v5 = vand.u32 2147483647, %v2325_v26  ;;  %v760_v63 = vmul.f32 -0.5, %v2346_v42  ;;  %v1419_v45 = vpop.eup %1418  ;;  %vm679_vm5 = vcmp.ge.f32.partialorder %v2120_v50, 0.0 }
  0xf2   : > { %v939_v44 = vsel %vm937_vm12, %v938_v4, %v936_v52  ;;  %vm680_vm6 = vcmp.ge.f32.partialorder %v2131_v55, 0.0  ;;  %v684_v21 = vmul.f32 %v1415_v40, %v2325_v26  ;;  %v2423_v19 = vmul.f32 %v2256_v34, %v725_v1 }
  0xf3   : > { %v2417_v16 = vsel %vm2209_vm2, %v939_v44, 0.0  ;;  %v2426_v4 = vmul.f32 %v2264_v2, %v734_v7  ;;  %v1421_v22 = vpop.eup %1420  ;;  %v2432_v52 = vsel %vm673_vm13, %v1407_v56, %v681_v28  ;;  %v2434_v44 = vmul.f32 0.6931472, %v1417_v17 }
  0xf4   : > { %2717 = vst [vmem:[#allocation29_spill] sm:$0xff] %v2417_v16  ;;  %942 = vadd.xlane.f32.xlu1 %v2417_v16  ;;  %v994_v23 = vmul.f32 %v993_v3, %v2417_v16  ;;  %vm2436_vm7 = vcmp.lt.f32.partialorder %v736_v30, 0.0004427343  ;;  %v1423_v34 = vpop.eup %1422  ;;  %v2442_v2 = vsel %vm674_vm14, %v1409_v58, %v682_v29  ;;  %v2446_v1 = vsel %vm675_vm15, %v1411_v0, %v683_v41 }
  0xf5   : > { %vm2448_vm8 = vcmp.lt.f32.partialorder %v745_v9, 0.0004427343  ;;  %v752_v27 = vadd.f32 1.0, %v751_v60  ;;  %v1425_v56 = vpop.eup %1424  ;;  %v2455_v7 = vmul.f32 %v2268_v47, %v743_v53  ;;  %vm2457_vm9 = vcmp.lt.f32.partialorder %v754_v5, 0.0004427343 }
  0xf6   : > { %v995_v28 = vsel %vm2209_vm2, %v994_v23, 0.0  ;;  %v761_v58 = vadd.f32 1.0, %v760_v63  ;;  %v1427_v33 = vpop.eup %1426  ;;  %v2463_v0 = vsel %vm676_vm0, %v1415_v40, %v684_v21  ;;  %v763_v29 = vand.u32 2147483647, %v2346_v42 }
  0xf7   : > { %1434 = vlog2.f32 %v2359_v14  ;;  %v769_v30 = vmul.f32 -0.5, %v2350_v38  ;;  %v1429_v9 = vpop.eup %1428  ;;  %v685_v47 = vmul.f32 %v1421_v22, %v2346_v42  ;;  %v2473_v60 = vmul.f32 0.6931472, %v1419_v45 }
  0xf8   : > { %996 = vadd.xlane.f32.xlu1 %v995_v28  ;;  %1436 = vlog2.f32 %v2367_v18  ;;  %v686_v35 = vmul.f32 %v1423_v34, %v2350_v38  ;;  %v687_v40 = vmul.f32 %v1425_v56, %v2355_v24  ;;  %v2479_v14 = vmul.f32 %v2325_v26, %v752_v27 }
  0xf9   : > { %v778_v17 = vmul.f32 -0.5, %v2355_v24  ;;  %v1431_v53 = vpop.eup %1430  ;;  %v688_v5 = vmul.f32 %v1427_v33, %v2364_v39  ;;  %v2483_v63 = vmul.f32 0.6931472, %v1429_v9  ;;  %v772_v21 = vand.u32 2147483647, %v2350_v38 }
  0xfa   : > { %1438 = vlog2.f32 %v2374_v57  ;;  %v1433_v45 = vpop.eup %1432  ;;  %v2487_v18 = vmul.f32 0.6931472, %v1431_v53  ;;  %v2490_v23 = vmul.f32 %v2346_v42, %v761_v58  ;;  %v770_v28 = vadd.f32 1.0, %v769_v30 }
  0xfb   : > { %v781_v26 = vand.u32 2147483647, %v2355_v24  ;;  %v2497_v9 = vmul.f32 0.6931472, %v1433_v45  ;;  %v779_v41 = vadd.f32 1.0, %v778_v17  ;;  %v787_v25 = vmul.f32 -0.5, %v2364_v39 }
  0xfc   : > { %v693_v57 = vsel %vm677_vm3, %v1421_v22, %v685_v47  ;;  %v694_v42 = vsel %vm678_vm4, %v1423_v34, %v686_v35  ;;  %vm2504_vm10 = vcmp.lt.f32.partialorder %v763_v29, 0.0004427343  ;;  %v790_v30 = vand.u32 2147483647, %v2364_v39 }
  0xfd   : > { %v695_v53 = vsel %vm679_vm5, %v1425_v56, %v687_v40  ;;  %v696_v17 = vsel %vm680_vm6, %v1427_v33, %v688_v5  ;;  %vm2513_vm11 = vcmp.lt.f32.partialorder %v772_v21, 0.0004427343  ;;  %v788_v36 = vadd.f32 1.0, %v787_v25 }
  0xfe   : > { %v747_v46 = vsel %vm2448_vm8, %v2455_v7, %v2483_v63  ;;  %v756_v22 = vsel %vm2457_vm9, %v2479_v14, %v2487_v18  ;;  %v771_v50 = vmul.f32 %v2350_v38, %v770_v28  ;;  %vm2526_vm12 = vcmp.lt.f32.partialorder %v781_v26, 0.0004427343 }
  0xff   : > { %v765_v25 = vsel %vm2504_vm10, %v2490_v23, %v2497_v9  ;;  %v780_v34 = vmul.f32 %v2355_v24, %v779_v41  ;;  %vm2535_vm13 = vcmp.lt.f32.partialorder %v790_v30, 0.0004427343  ;;  %v801_v56 = vmul.f32 %v2277_v48, %v2432_v52 }
 0x100   : > { %v789_v38 = vmul.f32 %v2364_v39, %v788_v36  ;;  %v802_v32 = vmul.f32 %v2280_v62, %v2442_v2  ;;  %v803_v33 = vmul.f32 %v2285_v6, %v2446_v1  ;;  %v804_v29 = vmul.f32 %v2290_v8, %v2463_v0 }
 0x101   : > { %v1435_v7 = vpop.eup %1434  ;;  %v805_v47 = vmul.f32 %v2294_v49, %v693_v57  ;;  %v806_v41 = vmul.f32 %v2301_v10, %v694_v42  ;;  %v807_v35 = vmul.f32 %v2305_v11, %v695_v53  ;;  %v809_v40 = vsub.f32 1.0, %v2432_v52 }
 0x102   : > { %v1437_v24 = vpop.eup %1436  ;;  %v768_v14 = vmul.f32 0.6931472, %v1435_v7  ;;  %v810_v39 = vsub.f32 1.0, %v2442_v2  ;;  %v811_v5 = vsub.f32 1.0, %v2446_v1  ;;  %v812_v63 = vsub.f32 1.0, %v2463_v0 }
 0x103   : > { %v777_v18 = vmul.f32 0.6931472, %v1437_v24  ;;  %v813_v23 = vsub.f32 1.0, %v693_v57  ;;  %v817_v28 = vsub.f32 1.0, %v2277_v48  ;;  %v818_v26 = vsub.f32 1.0, %v2280_v62 }
 0x104   : > { %v1439_v21 = vpop.eup %1438  ;;  %v814_v58 = vsub.f32 1.0, %v694_v42  ;;  %v815_v30 = vsub.f32 1.0, %v695_v53  ;;  %v819_v36 = vsub.f32 1.0, %v2285_v6  ;;  %v816_v52 = vsub.f32 1.0, %v696_v17 }
 0x105   : > { %v786_v9 = vmul.f32 0.6931472, %v1439_v21  ;;  %v820_v7 = vsub.f32 1.0, %v2290_v8  ;;  %v821_v2 = vsub.f32 1.0, %v2294_v49  ;;  %v822_v1 = vsub.f32 1.0, %v2301_v10 }
 0x106   : > { %v808_v0 = vmul.f32 %v2313_v15, %v696_v17  ;;  %v823_v57 = vsub.f32 1.0, %v2305_v11  ;;  %v824_v24 = vsub.f32 1.0, %v2313_v15  ;;  %v825_v27 = vmul.f32 %v817_v28, %v809_v40 }
 0x107   : > { %v774_v42 = vsel %vm2513_vm11, %v771_v50, %v768_v14  ;;  %v826_v53 = vmul.f32 %v818_v26, %v810_v39  ;;  %v827_v21 = vmul.f32 %v819_v36, %v811_v5  ;;  %v828_v16 = vmul.f32 %v820_v7, %v812_v63 }
 0x108   : > { %v783_v8 = vsel %vm2526_vm12, %v780_v34, %v777_v18  ;;  %v792_v49 = vsel %vm2535_vm13, %v789_v38, %v786_v9  ;;  %v829_v10 = vmul.f32 %v821_v2, %v813_v23  ;;  %v830_v6 = vmul.f32 %v822_v1, %v814_v58 }
 0x109   : > { %v831_v17 = vmul.f32 %v823_v57, %v815_v30  ;;  %v832_v40 = vmul.f32 %v824_v24, %v816_v52  ;;  %v833_v62 = vadd.f32 %v825_v27, %v801_v56  ;;  %v834_v45 = vadd.f32 %v826_v53, %v802_v32 }
 0x10a   : > { %v2732_v50 = vsel %vm2393_vm1, %v2423_v19, %v2434_v44  ;;  %v2733_v34 = vsel %vm2436_vm7, %v2426_v4, %v2473_v60  ;;  %v795_v38 = vadd.f32 %v747_v46, %v2380_v13  ;;  %v835_v14 = vadd.f32 %v827_v21, %v803_v33  ;;  %v2734_v46 = vld [vmem:[#allocation23_spill] sm:$0xff] }
 0x10b   : > { %v793_v55 = vadd.f32 %v2732_v50, %v2348_v43  ;;  %v794_v3 = vadd.f32 %v2733_v34, %v2362_v51  ;;  %v796_v27 = vadd.f32 %v756_v22, %v2382_v20  ;;  %v797_v56 = vadd.f32 %v765_v25, %v2384_v61  ;;  %v2735_v22 = vld [vmem:[#allocation24_spill] sm:$0xff] }
 0x10c   : > { %v798_v54 = vadd.f32 %v774_v42, %v2387_v59  ;;  %v836_v32 = vadd.f32 %v828_v16, %v804_v29  ;;  %v799_v19 = vadd.f32 %v783_v8, %v2389_v31  ;;  %v800_v43 = vadd.f32 %v792_v49, %v2391_v37  ;;  %v2736_v49 = vld [vmem:[#allocation25_spill] sm:$0xff] }
 0x10d   : > { %v837_v44 = vadd.f32 %v829_v10, %v805_v47  ;;  %v838_v12 = vadd.f32 %v830_v6, %v806_v41  ;;  %v839_v39 = vadd.f32 %v831_v17, %v807_v35  ;;  %v840_v5 = vadd.f32 %v832_v40, %v808_v0  ;;  %v2738_v41 = vld [vmem:[#allocation27_spill] sm:$0xff] }
 0x10e   : > { %v841_v4 = vsub.f32 1.0, %v833_v62  ;;  %v842_v51 = vsub.f32 1.0, %v834_v45  ;;  %v843_v60 = vsub.f32 1.0, %v835_v14  ;;  %v849_v13 = vmul.f32 0.25, %v2277_v48  ;;  %v2737_v62 = vld [vmem:[#allocation26_spill] sm:$0xff] }
 0x10f   : > { %v850_v20 = vmul.f32 0.25, %v2734_v46  ;;  %v851_v61 = vmul.f32 0.25, %v2735_v22  ;;  %v844_v25 = vsub.f32 1.0, %v836_v32  ;;  %v857_v59 = vmul.f32 0.75, %v817_v28  ;;  %v2740_v22 = vld [vmem:[#allocation29_spill] sm:$0xff] }
 0x110   : > { %v858_v16 = vmul.f32 0.75, %v818_v26  ;;  %v859_v33 = vmul.f32 0.75, %v819_v36  ;;  %v845_v8 = vsub.f32 1.0, %v837_v44  ;;  %v846_v31 = vsub.f32 1.0, %v838_v12 }
 0x111   : > { %v852_v10 = vmul.f32 0.25, %v2736_v49  ;;  %v860_v6 = vmul.f32 0.75, %v820_v7  ;;  %v847_v37 = vsub.f32 1.0, %v839_v39  ;;  %v848_v29 = vsub.f32 1.0, %v840_v5  ;;  %v2739_v39 = vld [vmem:[#allocation28_spill] sm:$0xff] }
 0x112   : > { %v853_v47 = vmul.f32 0.25, %v2737_v62  ;;  %v854_v35 = vmul.f32 0.25, %v2738_v41  ;;  %v861_v48 = vmul.f32 0.75, %v821_v2  ;;  %v865_v63 = vadd.f32 %v857_v59, %v849_v13 }
 0x113   : > { %v866_v18 = vadd.f32 %v858_v16, %v850_v20  ;;  %v867_v23 = vadd.f32 %v859_v33, %v851_v61  ;;  %v874_v9 = vmul.f32 %v841_v4, %v841_v4  ;;  %v875_v58 = vmul.f32 %v842_v51, %v842_v51  ;;  %v2741_v61 = vld [vmem:[#allocation21_spill] sm:$0xff] }
 0x114   : > { %v876_v28 = vmul.f32 %v843_v60, %v843_v60  ;;  %v877_v26 = vmul.f32 %v844_v25, %v844_v25  ;;  %v862_v30 = vmul.f32 0.75, %v822_v1  ;;  %v868_v36 = vadd.f32 %v860_v6, %v852_v10 }
 0x115   : > { %v878_v52 = vmul.f32 %v845_v8, %v845_v8  ;;  %v879_v0 = vmul.f32 %v846_v31, %v846_v31  ;;  %v882_v42 = vmul.f32 %v874_v9, %v793_v55  ;;  %v883_v7 = vmul.f32 %v875_v58, %v794_v3 }
 0x116   : > { %v884_v53 = vmul.f32 %v876_v28, %v795_v38  ;;  %v885_v21 = vmul.f32 %v877_v26, %v796_v27  ;;  %v855_v17 = vmul.f32 0.25, %v2305_v11  ;;  %v863_v2 = vmul.f32 0.75, %v823_v57 }
 0x117   : > { %v869_v40 = vadd.f32 %v861_v48, %v853_v47  ;;  %v880_v45 = vmul.f32 %v847_v37, %v847_v37  ;;  %v886_v50 = vmul.f32 %v878_v52, %v797_v56  ;;  %v890_v34 = vmul.f32 %v882_v42, %v865_v63 }
 0x118   : > { %v891_v14 = vmul.f32 %v883_v7, %v866_v18  ;;  %v892_v32 = vmul.f32 %v884_v53, %v867_v23  ;;  %v856_v1 = vmul.f32 0.25, %v2313_v15  ;;  %v864_v44 = vmul.f32 0.75, %v824_v24 }
 0x119   : > { %v870_v55 = vadd.f32 %v862_v30, %v854_v35  ;;  %v881_v3 = vmul.f32 %v848_v29, %v848_v29  ;;  %v887_v38 = vmul.f32 %v879_v0, %v798_v54  ;;  %v893_v27 = vmul.f32 %v885_v21, %v868_v36 }
 0x11a   : > { %v898_v12 = vadd.f32 %v891_v14, %v890_v34  ;;  %v1016_v5 = vadd.f32 1.0, %v2739_v39  ;;  %v871_v11 = vadd.f32 %v863_v2, %v855_v17  ;;  %v888_v57 = vmul.f32 %v880_v45, %v799_v19 }
 0x11b   : > { %v894_v4 = vmul.f32 %v886_v50, %v869_v40  ;;  %v1019_v56 = vmul.f32 -0.5, %v2739_v39  ;;  %v872_v60 = vadd.f32 %v864_v44, %v856_v1  ;;  %v889_v13 = vmul.f32 %v881_v3, %v800_v43 }
 0x11c   : > { %v899_v51 = vadd.f32 %v898_v12, %v892_v32  ;;  %1440 = vlog2.f32 %v1016_v5  ;;  %v895_v46 = vmul.f32 %v887_v38, %v870_v55  ;;  %v896_v15 = vmul.f32 %v888_v57, %v871_v11 }
 0x11d   : > { %v1014_v54 = vmul.f32 %v2741_v61, %v2740_v22  ;;  %v1020_v25 = vadd.f32 1.0, %v1019_v56  ;;  %v897_v59 = vmul.f32 %v889_v13, %v872_v60  ;;  %v1013_v19 = vmax.f32 %v2741_v61, 0.0 }
 0x11e   : > { %v900_v20 = vadd.f32 %v899_v51, %v893_v27  ;;  %v1022_v33 = vand.u32 2147483647, %v2739_v39 }
 0x11f   : > { %v1021_v31 = vmul.f32 %v2739_v39, %v1020_v25  ;;  %v1015_v10 = vsub.f32 %v1013_v19, %v1014_v54 }
 0x120   : > { %v901_v24 = vadd.f32 %v900_v20, %v894_v4  ;;  %vm1023_vm14 = vcmp.lt.f32.partialorder %v1022_v33, 0.0004427343 }
 0x122   : > { %v902_v16 = vadd.f32 %v901_v24, %v895_v46 }
 0x124   : > { %v903_v8 = vadd.f32 %v902_v16, %v896_v15 }
 0x126   : > { %v1441_v43 = vpop.eup %1440  ;;  %v904_v49 = vadd.f32 %v903_v8, %v897_v59 }
 0x127   : > { %v1018_v6 = vmul.f32 0.6931472, %v1441_v43 }
 0x128   : > { %905 = vadd.xlane.f32.xlu0 %v904_v49 }
 0x129   : > { %v1024_v37 = vsel %vm1023_vm14, %v1021_v31, %v1018_v6 }
 0x12a   : > { %v1025_v29 = vadd.f32 %v1024_v37, %v1015_v10 }
 0x12c   : > { %v1027_v47 = vsel %vm2209_vm2, %v1025_v29, 0.0 }
 0x12d   : > { %1028 = vadd.xlane.f32.xlu0 %v1027_v47 }
 0x15a   : > { %v572_v41 = vpop.xlane.xlu0 %571 }
 0x15b   : > { %v573_v35 = vrot.slane %v572_v41, 4 }
 0x15d   : > { %v574_v48 = vadd.f32 %v573_v35, %v572_v41 }
 0x15f   : > { %v575_v63 = vrot.slane %v574_v48, 2 }
 0x161   : > { %v576_v18 = vadd.f32 %v575_v63, %v574_v48 }
 0x163   : > { %v577_v23 = vrot.slane %v576_v18, 1 }
 0x165   : > { %v578_v9 = vadd.f32 %v577_v23, %v576_v18 }
 0x167   : > { %1260 = vpush %v578_v9 }
 0x181   : > { %v943_v58 = vpop.xlane.xlu1 %942 }
 0x182   : > { %v944_v30 = vrot.slane %v943_v58, 4 }
 0x184   : > { %v945_v52 = vadd.f32 %v944_v30, %v943_v58 }
 0x185   : > { %v997_v28 = vpop.xlane.xlu1 %996 }
 0x186   : > { %v998_v26 = vrot.slane %v997_v28, 4  ;;  %v946_v42 = vrot.slane %v945_v52, 2 }
 0x188   : > { %v999_v36 = vadd.f32 %v998_v26, %v997_v28  ;;  %v947_v2 = vadd.f32 %v946_v42, %v945_v52 }
 0x18a   : > { %v1000_v0 = vrot.slane %v999_v36, 2  ;;  %v948_v1 = vrot.slane %v947_v2, 1 }
 0x18c   : > { %v1001_v21 = vadd.f32 %v1000_v0, %v999_v36  ;;  %v949_v12 = vadd.f32 %v948_v1, %v947_v2 }
 0x18e   : > { %v1002_v14 = vrot.slane %v1001_v21, 1 }
 0x190   : > { %v1003_v38 = vadd.f32 %v1002_v14, %v1001_v21 }
 0x198   : > { %s1261_s29 = spop %1260 }
 0x199   : > { %s580_s26 = sadd.f32 %s1261_s29, %s1232_s27 }
 0x19b   : > { %582 = sst [smem:[#allocation2 + $0x1]] %s580_s26 }
 0x19c   : > { %s1248_s12 = sld [smem:[#allocation2 + $0x1]] (%p413_p1) }
 0x1a2   : > { %s1043_s17 = smax.f32 (%p413_p1), %s1672_s30, %s1248_s12  ;;  %p1046_p6 = scmp.gt.f32.partialorder (%p413_p1), %s1248_s12, 0.0 }
 0x1a3   : > { %v1048_v11 = vstv (%p413_p1), %s1043_s17 }
 0x1a4   : > { %1442 = vrcp.f32 (%p413_p1), %v1048_v11 }
 0x1ae   : > { %v1443_v4 = vpop.eup (%p413_p1), %1442 }
 0x1b5   : > { %v906_v7 = vpop.xlane.xlu0 %905 }
 0x1b6   : > { %v907_v53 = vrot.slane %v906_v7, 4 }
 0x1b8   : > { %v908_v17 = vadd.f32 %v907_v53, %v906_v7 }
 0x1ba   : > { %v909_v40 = vrot.slane %v908_v17, 2  ;;  %v1029_v45 = vpop.xlane.xlu0 %1028 }
 0x1bb   : > { %v1030_v50 = vrot.slane %v1029_v45, 4 }
 0x1bc   : > { %v910_v34 = vadd.f32 %v909_v40, %v908_v17 }
 0x1bd   : > { %v1031_v32 = vadd.f32 %v1030_v50, %v1029_v45 }
 0x1be   : > { %v911_v44 = vrot.slane %v910_v34, 1 }
 0x1bf   : > { %v1032_v55 = vrot.slane %v1031_v32, 2 }
 0x1c0   : > { %v912_v3 = vadd.f32 %v911_v44, %v910_v34 }
 0x1c1   : > { %v1033_v27 = vadd.f32 %v1032_v55, %v1031_v32 }
 0x1c2   : > { %1264 = vpush %v912_v3 }
 0x1c3   : > { %1266 = vpush %v949_v12  ;;  %v1034_v39 = vrot.slane %v1033_v27, 1 }
 0x1c4   : > { %1268 = vpush %v1003_v38 }
 0x1c5   : > { %v1035_v5 = vadd.f32 %v1034_v39, %v1033_v27 }
 0x1c7   : > { %1270 = vpush %v1035_v5 }
 0x1c8   : > { %1272 = vpush (%p413_p1), %v1443_v4 }
 0x1f3   : > { %s1265_s9 = spop %1264 }
 0x1f4   : > { %s914_s0 = sadd.f32 %s1265_s9, %s873_s28  ;;  %s1267_s18 = spop %1266 }
 0x1f5   : > { %s951_s14 = sadd.f32 %s1267_s18, %s1242_s25  ;;  %s1269_s11 = spop %1268 }
 0x1f6   : > { %916 = sst [smem:[#allocation2]] %s914_s0  ;;  %1041 = sbr.rel (!%p413_p1) target bundleno = 578 (0x242), region = 68 }
 0x1f7   : > { %953 = sst [smem:[#allocation2 + $0x2]] %s951_s14  ;;  %s1047_s29 = sld [smem:[#allocation2]] (%p413_p1) }
 0x1f8   : > { %s1005_s16 = sadd.f32 %s1269_s11, %s1246_s2  ;;  %s1271_s13 = spop %1270 }
 0x1f9   : > { %s1037_s5 = sadd.f32 %s1271_s13, %s1247_s19  ;;  %s1249_s15 = sld [smem:[#allocation2 + $0x2]] (%p413_p1) }
 0x1fa   : > { %1007 = sst [smem:[#allocation2 + $0x3]] %s1005_s16  ;;  %s1273_s21 = spop (%p413_p1), %1272 }
 0x1fb   : > { %1039 = sst [smem:[#allocation2 + $0x4]] %s1037_s5  ;;  %s1250_s28 = sld [smem:[#allocation2 + $0x3]] (%p413_p1) }
 0x1fc   : > { %s1251_s26 = sld [smem:[#allocation2 + $0x4]] (%p413_p1) }
 0x1fd   : > { %s1051_s25 = smul.f32 %s1273_s21, %s1047_s29 }
 0x1ff   : > { %s1045_s27 = smax.f32 %s1673_s10, %s1249_s15  ;;  %1053 = sst [smem:[#allocation13]] %s1051_s25 }
 0x200   : > { %v1055_v57 = vstv %s1045_s27 }
 0x201   : > { %1444 = vrcp.f32 %v1055_v57 }
 0x202   : > { %s1066_s19 = smul.f32 %s1273_s21, %s1251_s26 }
 0x204   : > { %s2753_s19 = smov (!%p1046_p6, %s1066_s19), 0.0 }
 0x205   : > { %1069 = sst [smem:[#allocation13 + $0x2]] %s2753_s19 }
 0x20b   : > { %v1445_v51 = vpop.eup %1444 }
 0x20c   : > { %1274 = vpush %v1445_v51 }
 0x23d   : > { %s1275_s2 = spop %1274 }
 0x23e   : > { %s1058_s9 = smul.f32 %s1275_s2, %s1250_s28 }
 0x240   : > { %s2755_s9 = smov (!%p1046_p6, %s1058_s9), 0.0 }
 0x241   : > { %1061 = sst [smem:[#allocation13 + $0x1]] %s2755_s9 }
 0x242 PF: > { %p1319_p10 = scmp.eq.s32.totalorder %s1764_s24, 1  ;;  %s1584_s14 = scalar_lea.hbm %s2655_s8, 16 }
 0x243   : > { %p1585_p3 = scmp.ne.s32.totalorder %s2655_s8, %s1584_s14  ;;  %p1590_p5 = scmp.lt.u32.totalorder %s1584_s14, %s2655_s8 }
 0x245   : > { %p1586_p4 = pnand %p1585_p3, %p1319_p10 }
 0x247   : > { %p1587_p11 = pneg %p1586_p4 }
 0x249   : > { %p1592_p0 = pnand %p1590_p5, %p1587_p11 }
 0x24b   : > { %1595 = shalt.err (!%p1592_p0)
}
 0x24c   : > { %s1674_s12 = smov [#allocation13]  }
 0x24d   : > { %1297 = dma.smem_to_hbm (%p1319_p10), %s1674_s12, 16, %s2655_s8, [#allocation8]  }
 0x24e   : > { %1635 = dma.done.wait (%p1319_p10), [#allocation8], 16  }
 0x24f   : > { %1637 = vsyncadd (%p1319_p10), [#allocation8], 4294967280 }
 0x250   : > { %1083 = sfence }
 0x251 PF: > { %s29_s23 = sadd.s32 1, %s1660_s23   ;;  %s2743_s24 = sld [smem:[#allocation20_spill]] }
 0x252   : > { %p26_p2 = scmp.ge.s32.totalorder %s29_s23, 4   ;;  %s2744_s17 = sld [smem:[#allocation19_spill]] }
 0x253   : > { %s2745_s0 = smov %s1644_s20  ;;  %s2746_s20 = smov %s1648_s1 }
 0x254   : > { %s2748_s21 = smov %s1656_s22  ;;  %28 = sbr.rel (!%p26_p2) target bundleno = 28 (0x1c), region = 136 }
 0x257   : > { %s2747_s1 = smov %s2743_s24 }
 0x258   : > { %s2749_s22 = smov %s2744_s17 }
 0x25b   :  { %1089 = vsyncpa [#allocation7], 1 }
 0x25c   :  { %1091 = vsyncpa [#allocation7 + $0x1], 1 }
 0x25d   :  { %1092 = vsyncpa [#allocation10], 1 }
 0x25e   :  { %1093 = vsyncpa [#allocation8], 1 }
 0x25f   :  { %1095 = vsyncpa [#allocation8 + $0x1], 1 }

</bundles_post_ra>
